<compile_context>
chip_gen: v7x
topology: tpu7x:2x2x1
jax: 0.10.0
libtpu: 0.0.40
codegen_flags: <defaults>
</compile_context>

<pallas_src>
import functools

import jax
import jax.numpy as jnp
from jax import lax
from jax.experimental import pallas as pl
from jax.experimental.pallas import tpu as pltpu


def _round_up(v, m):
    return ((v + m - 1) // m) * m


# ----------------------------- Pallas kernel --------------------------------
def tac_tile_kernel(xc_ref, wcat_ref, bconv_ref, gap_ref, wph_ref, bhcat_ref,
                    out_ref, *, inv_hw, code_pad):
    """Fused TAC forward for one batch tile (TB samples merged on lanes).

    xc_ref    : (1, 9*Cin_pad, TB*HWp)  bf16  wrapper-side im2col columns
    wcat_ref  : (C, 9*Cin_pad)          bf16  conv weight, tap-major
    bconv_ref : (C, 1)                  f32   conv bias
    gap_ref   : (TB*HWp, TB)            bf16  0/1 block-diag pooling mask
    wph_ref   : (C, code+cls+feat pad)  bf16  [proj | head | identity]
    bhcat_ref : (1, cls+feat pad)       f32   [head bias | zeros]
    out_ref   : (TB, code+cls+feat pad) f32   [tanh codes | logits | features]
    """
    # conv3x3 for the whole batch tile: ONE lane-dense bf16 MXU matmul.
    f = jnp.dot(wcat_ref[...], xc_ref[0],
                preferred_element_type=jnp.float32)              # (C, TB*HWp)
    f = jnp.maximum(f + bconv_ref[...], 0.0)                     # bias + ReLU

    # global-average-pool on the MXU in bf16 against a 0/1 block-diag mask
    # (zeroes spatial padding); the exact 1/(H*W) scale is applied in f32.
    pooled_t = jnp.dot(f.astype(jnp.bfloat16), gap_ref[...],
                       preferred_element_type=jnp.float32) * inv_hw   # (C, TB)

    # fused projection + classification head + feature pass-through:
    # contraction over C (trans_a form, bf16) -> (TB, code+cls+feat).
    z = lax.dot_general(pooled_t.astype(jnp.bfloat16), wph_ref[...],
                        dimension_numbers=(((0,), (0,)), ((), ())),
                        preferred_element_type=jnp.float32)

    # single fused output block; both stores are 128-lane aligned segments.
    out_ref[:, :code_pad] = jnp.tanh(z[:, :code_pad])
    out_ref[:, code_pad:] = z[:, code_pad:] + bhcat_ref[...]


# ------------------------------ JAX wrapper ---------------------------------
def _block_diag(proj_w):
    ns, ss, bits = proj_w.shape
    wbd = jnp.zeros((ns * ss, ns * bits), jnp.float32)
    for s in range(ns):
        wbd = wbd.at[s * ss:(s + 1) * ss, s * bits:(s + 1) * bits].set(
            proj_w[s].astype(jnp.float32))
    return wbd


@jax.jit
def tac_forward(x_nchw, params):
    """Returns (codes, head_logits, pooled_features) like TAC's eval path."""
    n, cin, h, w = x_nchw.shape
    conv_w, conv_b = params["conv_w"], params["conv_b"]
    proj_w, head_w, head_b = params["proj_w"], params["head_w"], params["head_b"]

    cout = conv_w.shape[0]
    code_len = proj_w.shape[0] * proj_w.shape[2]
    ncls = head_w.shape[1]

    # ---- batch tile: big enough to amortize per-step overhead, but keep
    # num_tiles >= 2 (even) when the batch allows so v7x's 2 TCs both work.
    if n >= 64:
        tb = 32
    else:
        tb = max(8, min(32, _round_up(-(-n // 2), 8)))
    num_tiles = -(-n // tb)
    n_pad = num_tiles * tb

    cin_pad = _round_up(cin, 8)
    kdim = 9 * cin_pad
    hw = h * w
    hw_pad = _round_up(hw, 128)              # per-sample lane stride
    q_len = tb * hw_pad                      # lane width of one tile

    code_pad = _round_up(code_len, 128)
    ncls_pad = _round_up(ncls, 128)
    feat_pad = _round_up(cout, 128)
    total_pad = code_pad + ncls_pad + feat_pad

    # ---- wrapper-side im2col (no unaligned lane slicing inside the kernel)
    xp = jnp.pad(x_nchw.astype(jnp.float32),
                 ((0, n_pad - n), (0, cin_pad - cin), (1, 1), (1, 1)))
    taps = [xp[:, :, dy:dy + h, dx:dx + w]
            for dy in range(3) for dx in range(3)]
    pat = jnp.stack(taps, axis=1)                    # (n_pad, 9, Cin_pad, H, W)
    pat = pat.reshape(n_pad, kdim, hw)
    pat = jnp.pad(pat, ((0, 0), (0, 0), (0, hw_pad - hw)))
    x_cols = (pat.reshape(num_tiles, tb, kdim, hw_pad)
                 .transpose(0, 2, 1, 3)
                 .reshape(num_tiles, kdim, q_len)
                 .astype(jnp.bfloat16))

    # ---- conv weight (Cout, Cin, 3, 3) -> (Cout, 9*Cin_pad), tap-major order
    wct = jnp.transpose(conv_w.astype(jnp.float32), (0, 2, 3, 1))
    wct = jnp.pad(wct, ((0, 0), (0, 0), (0, 0), (0, cin_pad - cin)))
    wcat = wct.reshape(cout, kdim).astype(jnp.bfloat16)
    bconv = conv_b.reshape(cout, 1).astype(jnp.float32)

    # ---- exact 0/1 block-diag GAP mask (bf16), 1/(H*W) applied in-kernel
    jj = jnp.arange(q_len)
    gmat = (((jj % hw_pad) < hw)[:, None]
            & ((jj // hw_pad)[:, None] == jnp.arange(tb)[None, :])
            ).astype(jnp.bfloat16)                               # (q_len, TB)

    # ---- fused [block-diag proj | head | identity] weight, bf16, lane padded
    wbd = _block_diag(proj_w)
    wph = jnp.zeros((cout, total_pad), jnp.float32)
    wph = wph.at[:, :code_len].set(wbd)
    wph = wph.at[:, code_pad:code_pad + ncls].set(head_w.astype(jnp.float32))
    wph = wph.at[:, code_pad + ncls_pad:code_pad + ncls_pad + cout].set(
        jnp.eye(cout, dtype=jnp.float32))
    wph = wph.astype(jnp.bfloat16)
    bhcat = jnp.zeros((1, ncls_pad + feat_pad), jnp.float32)
    bhcat = bhcat.at[0, :ncls].set(head_b.astype(jnp.float32))

    kernel = functools.partial(tac_tile_kernel, inv_hw=1.0 / hw,
                               code_pad=code_pad)

    out = pl.pallas_call(
        kernel,
        out_shape=jax.ShapeDtypeStruct((n_pad, total_pad), jnp.float32),
        grid=(num_tiles,),
        in_specs=[
            pl.BlockSpec((1, kdim, q_len), lambda i: (i, 0, 0)),
            pl.BlockSpec(wcat.shape, lambda i: (0, 0)),
            pl.BlockSpec(bconv.shape, lambda i: (0, 0)),
            pl.BlockSpec(gmat.shape, lambda i: (0, 0)),
            pl.BlockSpec(wph.shape, lambda i: (0, 0)),
            pl.BlockSpec(bhcat.shape, lambda i: (0, 0)),
        ],
        out_specs=pl.BlockSpec((tb, total_pad), lambda i: (i, 0)),
        compiler_params=pltpu.CompilerParams(
            dimension_semantics=("parallel",),
            vmem_limit_bytes=32 << 20),
    )(x_cols, wcat, bconv, gmat, wph, bhcat)

    codes = out[:n, :code_len]
    logits = out[:n, code_pad:code_pad + ncls]
    feats = out[:n, code_pad + ncls_pad:code_pad + ncls_pad + cout]
    return codes, logits, feats


def init_params(key, cin=3, cout=32, num_slices=4, code_len=32, ncls=10):
    k0, k1, k2, k3 = jax.random.split(key, 4)
    slice_sz = cout // num_slices
    bits = code_len // num_slices
    return {
        "conv_w": 0.1 * jax.random.normal(k0, (cout, cin, 3, 3), jnp.float32),
        "conv_b": jnp.zeros((cout,), jnp.float32),
        "proj_w": 0.1 * jax.random.normal(k1, (num_slices, slice_sz, bits),
                                          jnp.float32),
        "head_w": 0.1 * jax.random.normal(k2, (cout, ncls), jnp.float32),
        "head_b": 0.01 * jax.random.normal(k3, (ncls,), jnp.float32),
    }


if __name__ == "__main__":
    key = jax.random.PRNGKey(0)
    kx, kp = jax.random.split(key)
    x = jax.random.normal(kx, (2, 3, 16, 16), jnp.float32)   # NCHW, like torch
    params = init_params(kp)

    codes, logits, feats = tac_forward(x, params)
    jax.block_until_ready((codes, logits, feats))

    # pure-JAX reference (mirrors the kernel's bf16 conv inputs, f32 accum)
    xb = x.astype(jnp.bfloat16).astype(jnp.float32)
    wb = params["conv_w"].astype(jnp.bfloat16).astype(jnp.float32)
    rf = lax.conv_general_dilated(xb, wb, (1, 1), "SAME",
                                  dimension_numbers=("NCHW", "OIHW", "NCHW"))
    rf = jnp.maximum(rf + params["conv_b"][None, :, None, None], 0.0)
    rpool = rf.reshape(rf.shape[0], rf.shape[1], -1).mean(-1)      # (N, C)
    rcodes = jnp.tanh(rpool @ _block_diag(params["proj_w"]))
    rlogits = rpool @ params["head_w"] + params["head_b"]

    assert jnp.allclose(feats, rpool, atol=2e-2, rtol=2e-2), "feature mismatch"
    assert jnp.allclose(codes, rcodes, atol=2e-2, rtol=2e-2), "codes mismatch"
    assert jnp.allclose(logits, rlogits, atol=2e-2, rtol=2e-2), "logits mismatch"

    print("KERNEL_OK")
</pallas_src>

<mosaic_0001>
module attributes {stable_mosaic.version = 11 : i64} {
  func.func @tac_tile_kernel(%arg0: i32, %arg1: memref<1x72x2048xbf16, #tpu.memory_space<vmem>>, %arg2: memref<32x72xbf16, #tpu.memory_space<vmem>>, %arg3: memref<32x1xf32, #tpu.memory_space<vmem>>, %arg4: memref<2048x8xbf16, #tpu.memory_space<vmem>>, %arg5: memref<32x384xbf16, #tpu.memory_space<vmem>>, %arg6: memref<1x256xf32, #tpu.memory_space<vmem>>, %arg7: memref<8x384xf32, #tpu.memory_space<vmem>>) attributes {dimension_semantics = [#tpu.dimension_semantics<parallel>], iteration_bounds = array<i64: 1>, scalar_prefetch = 0 : i64, scratch_operands = 0 : i64, tpu.core_type = #tpu.core_type<tc>, window_params = [{transform_indices = @transform_0, window_bounds = array<i64: 1, 72, 2048>}, {pipeline_mode = #tpu.pipeline_mode<synchronous>, transform_indices = @transform_1, window_bounds = array<i64: 32, 72>}, {pipeline_mode = #tpu.pipeline_mode<synchronous>, transform_indices = @transform_2, window_bounds = array<i64: 32, 1>}, {pipeline_mode = #tpu.pipeline_mode<synchronous>, transform_indices = @transform_3, window_bounds = array<i64: 2048, 8>}, {pipeline_mode = #tpu.pipeline_mode<synchronous>, transform_indices = @transform_4, window_bounds = array<i64: 32, 384>}, {pipeline_mode = #tpu.pipeline_mode<synchronous>, transform_indices = @transform_5, window_bounds = array<i64: 1, 256>}, {transform_indices = @transform_6, window_bounds = array<i64: 8, 384>}]} {
    %c0 = arith.constant 0 : index
    %c0_0 = arith.constant 0 : index
    %0 = vector.load %arg2[%c0, %c0_0] : memref<32x72xbf16, #tpu.memory_space<vmem>>, vector<32x72xbf16>
    %c0_1 = arith.constant 0 : index
    %c0_2 = arith.constant 0 : index
    %c0_3 = arith.constant 0 : index
    %1 = vector.load %arg1[%c0_1, %c0_2, %c0_3] : memref<1x72x2048xbf16, #tpu.memory_space<vmem>>, vector<1x72x2048xbf16>
    %2 = vector.shape_cast %1 : vector<1x72x2048xbf16> to vector<72x2048xbf16>
    %cst = arith.constant dense<0.000000e+00> : vector<32x2048xf32>
    %3 = tpu.matmul %0, %2, %cst {dimension_numbers = #tpu.dot_dimension_numbers<[1], [0], [0], [1], [0, 0, 1, 1], [], []>} : vector<32x72xbf16>, vector<72x2048xbf16>, vector<32x2048xf32> -> vector<32x2048xf32>
    %c0_4 = arith.constant 0 : index
    %c0_5 = arith.constant 0 : index
    %4 = vector.load %arg3[%c0_4, %c0_5] : memref<32x1xf32, #tpu.memory_space<vmem>>, vector<32x1xf32>
    %5 = vector.broadcast %4 : vector<32x1xf32> to vector<32x2048xf32>
    %6 = arith.addf %3, %5 : vector<32x2048xf32>
    %cst_6 = arith.constant 0.000000e+00 : f32
    %7 = vector.broadcast %cst_6 : f32 to vector<32x2048xf32>
    %8 = arith.maximumf %6, %7 : vector<32x2048xf32>
    %9 = arith.truncf %8 : vector<32x2048xf32> to vector<32x2048xbf16>
    %c0_7 = arith.constant 0 : index
    %c0_8 = arith.constant 0 : index
    %10 = vector.load %arg4[%c0_7, %c0_8] : memref<2048x8xbf16, #tpu.memory_space<vmem>>, vector<2048x8xbf16>
    %cst_9 = arith.constant dense<0.000000e+00> : vector<32x8xf32>
    %11 = tpu.matmul %9, %10, %cst_9 {dimension_numbers = #tpu.dot_dimension_numbers<[1], [0], [0], [1], [0, 0, 1, 1], [], []>} : vector<32x2048xbf16>, vector<2048x8xbf16>, vector<32x8xf32> -> vector<32x8xf32>
    %cst_10 = arith.constant 3.906250e-03 : f32
    %12 = vector.broadcast %cst_10 : f32 to vector<32x8xf32>
    %13 = arith.mulf %11, %12 : vector<32x8xf32>
    %14 = arith.truncf %13 : vector<32x8xf32> to vector<32x8xbf16>
    %c0_11 = arith.constant 0 : index
    %c0_12 = arith.constant 0 : index
    %15 = vector.load %arg5[%c0_11, %c0_12] : memref<32x384xbf16, #tpu.memory_space<vmem>>, vector<32x384xbf16>
    %cst_13 = arith.constant dense<0.000000e+00> : vector<8x384xf32>
    %16 = tpu.matmul %14, %15, %cst_13 {dimension_numbers = #tpu.dot_dimension_numbers<[0], [0], [1], [1], [0, 1, 1, 1], [], []>} : vector<32x8xbf16>, vector<32x384xbf16>, vector<8x384xf32> -> vector<8x384xf32>
    %17 = vector.extract_strided_slice %16 {offsets = [0, 0], sizes = [8, 128], strides = [1, 1]} : vector<8x384xf32> to vector<8x128xf32>
    %18 = math.tanh %17 : vector<8x128xf32>
    %c0_14 = arith.constant 0 : index
    %c0_15 = arith.constant 0 : index
    %19 = vector.load %arg7[%c0_14, %c0_15] : memref<8x384xf32, #tpu.memory_space<vmem>>, vector<8x128xf32>
    tpu.vector_store %arg7[%c0_14, %c0_15], %18 {strides = array<i32>} : memref<8x384xf32, #tpu.memory_space<vmem>>, vector<8x128xf32>,
    %20 = vector.extract_strided_slice %16 {offsets = [0, 128], sizes = [8, 256], strides = [1, 1]} : vector<8x384xf32> to vector<8x256xf32>
    %c0_16 = arith.constant 0 : index
    %c0_17 = arith.constant 0 : index
    %21 = vector.load %arg6[%c0_16, %c0_17] : memref<1x256xf32, #tpu.memory_space<vmem>>, vector<1x256xf32>
    %22 = vector.broadcast %21 : vector<1x256xf32> to vector<8x256xf32>
    %23 = arith.addf %20, %22 : vector<8x256xf32>
    %c0_18 = arith.constant 0 : index
    %c128 = arith.constant 128 : index
    %24 = vector.load %arg7[%c0_18, %c128] : memref<8x384xf32, #tpu.memory_space<vmem>>, vector<8x256xf32>
    tpu.vector_store %arg7[%c0_18, %c128], %23 {strides = array<i32>} : memref<8x384xf32, #tpu.memory_space<vmem>>, vector<8x256xf32>,
    return
  }
  func.func @transform_0(%arg0: i32) -> (i32, i32, i32) {
    %c0_i32 = arith.constant 0 : i32
    %c0_i32_0 = arith.constant 0 : i32
    %c0_i32_1 = arith.constant 0 : i32
    return %arg0, %c0_i32, %c0_i32_0 : i32, i32, i32
  }
  func.func @transform_1(%arg0: i32) -> (i32, i32) {
    %c0_i32 = arith.constant 0 : i32
    %c0_i32_0 = arith.constant 0 : i32
    %c0_i32_1 = arith.constant 0 : i32
    return %c0_i32, %c0_i32_0 : i32, i32
  }
  func.func @transform_2(%arg0: i32) -> (i32, i32) {
    %c0_i32 = arith.constant 0 : i32
    %c0_i32_0 = arith.constant 0 : i32
    %c0_i32_1 = arith.constant 0 : i32
    return %c0_i32, %c0_i32_0 : i32, i32
  }
  func.func @transform_3(%arg0: i32) -> (i32, i32) {
    %c0_i32 = arith.constant 0 : i32
    %c0_i32_0 = arith.constant 0 : i32
    %c0_i32_1 = arith.constant 0 : i32
    return %c0_i32, %c0_i32_0 : i32, i32
  }
  func.func @transform_4(%arg0: i32) -> (i32, i32) {
    %c0_i32 = arith.constant 0 : i32
    %c0_i32_0 = arith.constant 0 : i32
    %c0_i32_1 = arith.constant 0 : i32
    return %c0_i32, %c0_i32_0 : i32, i32
  }
  func.func @transform_5(%arg0: i32) -> (i32, i32) {
    %c0_i32 = arith.constant 0 : i32
    %c0_i32_0 = arith.constant 0 : i32
    %c0_i32_1 = arith.constant 0 : i32
    return %c0_i32, %c0_i32_0 : i32, i32
  }
  func.func @transform_6(%arg0: i32) -> (i32, i32) {
    %c0_i32 = arith.constant 0 : i32
    %c0_i32_0 = arith.constant 0 : i32
    return %arg0, %c0_i32 : i32, i32
  }
}

</mosaic_0001>

<bundles_post_ra>
// kernel: tac_forward.1
= control target key start
LH: loop header
LB: loop body
LE: loop exit
PB: predicated region body
PF: predicated region fallthrough
CT: control target
= control target key end

     0   :  { %v3293_v3 = vmov 0   ;;  %vm501_vm0 = vcmask 1043456   ;;  %vm494_vm1 = vcmask 588800   ;;  %vm3295_vm2 = vmmov 0   ;;  %s4194_s0 = inlined_call_operand.vmem [shape: bf16[1,72,2048], index: 0, kind: input, shape index: {}]   ;;  %s4195_s1 = inlined_call_operand.vmem [shape: bf16[32,72], index: 1, kind: input, shape index: {}]   ;;  %s4196_s2 = inlined_call_operand.vmem [shape: f32[32,1], index: 2, kind: input, shape index: {}]   ;;  %s4197_s3 = inlined_call_operand.vmem [shape: bf16[2048,8], index: 3, kind: input, shape index: {}]   ;;  %s4198_s4 = inlined_call_operand.vmem [shape: bf16[32,384], index: 4, kind: input, shape index: {}]   ;;  %s4199_s5 = inlined_call_operand.vmem [shape: f32[1,256], index: 5, kind: input, shape index: {}]   ;;  %s4200_s6 = inlined_call_operand.vmem [shape: f32[8,384], index: 6, kind: output, shape index: {}]  }
   0x1   :  { %v28_v0 = vld [vmem:[%s4194_s0] sm:$0xff]  ;;  %v29_v2 = vld [vmem:[%s4194_s0 + $0x8] sm:$0xff]  ;;  %582 = vmatprep.mubr.bf16.mxu0 %v3293_v3  ;;  %635 = vmatprep.mubr.bf16.mxu1 %v3293_v3  ;;  %v30_v39 = vld [vmem:[%s4194_s0 + $0x10] sm:$0xff]  ;;  %vm2548_vm3 = vcmask 261120  }
   0x2   :  { %v36_v1 = vld [vmem:[%s4194_s0 + $0x40] sm:$0xff]  ;;  %v37_v5 = vld [vmem:[%s4194_s0 + $0x48] sm:$0xff]  ;;  %3135 = vset.pattern.permute.xlu0 %v3293_v3  ;;  %3136 = vset.pattern.permute.xlu1 %v3293_v3  ;;  %v38_v40 = vld [vmem:[%s4194_s0 + $0x50] sm:$0xff] }
   0x3   :  { %v2658_v4 = vcombine.high %v28_v0, %v36_v1  ;;  %v2657_v6 = vcombine.low %v28_v0, %v36_v1  ;;  %v44_v7 = vld [vmem:[%s4194_s0 + $0x80] sm:$0xff]  ;;  %v2660_v9 = vcombine.high %v29_v2, %v37_v5  ;;  %v2659_v10 = vcombine.low %v29_v2, %v37_v5  ;;  %v45_v12 = vld [vmem:[%s4194_s0 + $0x88] sm:$0xff]  ;;  %v31_v41 = vld [vmem:[%s4194_s0 + $0x18] sm:$0xff] }
   0x4   :  { %v52_v8 = vld [vmem:[%s4194_s0 + $0xc0] sm:$0xff]  ;;  %v53_v13 = vld [vmem:[%s4194_s0 + $0xc8] sm:$0xff]  ;;  %v39_v42 = vld [vmem:[%s4194_s0 + $0x58] sm:$0xff]  ;;  %v2662_v44 = vcombine.high %v30_v39, %v38_v40  ;;  %v2661_v52 = vcombine.low %v30_v39, %v38_v40 }
   0x5   :  { %v2674_v11 = vcombine.high %v44_v7, %v52_v8  ;;  %v60_v14 = vld [vmem:[%s4194_s0 + $0x100] sm:$0xff]  ;;  %550 = vmatprep.subr.bf16.mxu0 %v2658_v4  ;;  %v2676_v15 = vcombine.high %v45_v12, %v53_v13  ;;  %v61_v17 = vld [vmem:[%s4194_s0 + $0x108] sm:$0xff]  ;;  %603 = vmatprep.subr.bf16.mxu1 %v2660_v9  ;;  %v2673_v19 = vcombine.low %v44_v7, %v52_v8  ;;  %v46_v47 = vld [vmem:[%s4194_s0 + $0x90] sm:$0xff] }
   0x6   :  { %v68_v16 = vld [vmem:[%s4194_s0 + $0x140] sm:$0xff]  ;;  %v69_v18 = vld [vmem:[%s4194_s0 + $0x148] sm:$0xff]  ;;  %551 = vmatpush1.bf16.msra.mxu0 %v2657_v6  ;;  %604 = vmatpush1.bf16.msra.mxu1 %v2659_v10  ;;  %v2675_v20 = vcombine.low %v45_v12, %v53_v13  ;;  %v2664_v46 = vcombine.high %v31_v41, %v39_v42  ;;  %v54_v48 = vld [vmem:[%s4194_s0 + $0xd0] sm:$0xff]  ;;  %v2663_v53 = vcombine.low %v31_v41, %v39_v42 }
   0x7   :  { %552 = vmatprep.subr.bf16.mxu0 %v2674_v11  ;;  %v2690_v21 = vcombine.high %v60_v14, %v68_v16  ;;  %v76_v22 = vld [vmem:[%s4194_s0 + $0x180] sm:$0xff]  ;;  %605 = vmatprep.subr.bf16.mxu1 %v2676_v15  ;;  %v2692_v23 = vcombine.high %v61_v17, %v69_v18  ;;  %v77_v25 = vld [vmem:[%s4194_s0 + $0x188] sm:$0xff]  ;;  %v2689_v27 = vcombine.low %v60_v14, %v68_v16  ;;  %v47_v50 = vld [vmem:[%s4194_s0 + $0x98] sm:$0xff] }
   0x8   :  { %v84_v24 = vld [vmem:[%s4194_s0 + $0x1c0] sm:$0xff]  ;;  %v85_v26 = vld [vmem:[%s4194_s0 + $0x1c8] sm:$0xff]  ;;  %v2691_v28 = vcombine.low %v61_v17, %v69_v18  ;;  %v55_v51 = vld [vmem:[%s4194_s0 + $0xd8] sm:$0xff]  ;;  %v2678_v54 = vcombine.high %v46_v47, %v54_v48  ;;  %v2677_v60 = vcombine.low %v46_v47, %v54_v48 }
   0x9   :  { %v2706_v29 = vcombine.high %v76_v22, %v84_v24  ;;  %v2708_v30 = vcombine.high %v77_v25, %v85_v26  ;;  %v92_v31 = vld [vmem:[%s4194_s0 + $0x200] sm:$0xff]  ;;  %v93_v32 = vld [vmem:[%s4194_s0 + $0x208] sm:$0xff]  ;;  %v2705_v33 = vcombine.low %v76_v22, %v84_v24  ;;  %v2707_v34 = vcombine.low %v77_v25, %v85_v26  ;;  %v62_v56 = vld [vmem:[%s4194_s0 + $0x110] sm:$0xff] }
   0xa   :  { %553 = vmatpush1.bf16.msra.mxu0 %v2673_v19  ;;  %606 = vmatpush1.bf16.msra.mxu1 %v2675_v20  ;;  %v2722_v35 = vcombine.high %v92_v31, %v92_v31  ;;  %v2721_v36 = vcombine.low %v92_v31, %v92_v31  ;;  %v2724_v37 = vcombine.high %v93_v32, %v93_v32  ;;  %v3414_v49 = vld [vmem:[%s4195_s1] sm:$0xff]   ;;  %v70_v57 = vld [vmem:[%s4194_s0 + $0x150] sm:$0xff]  ;;  %v63_v58 = vld [vmem:[%s4194_s0 + $0x118] sm:$0xff] }
   0xb   :  { %554 = vmatprep.subr.bf16.mxu0 %v2690_v21  ;;  %607 = vmatprep.subr.bf16.mxu1 %v2692_v23  ;;  %v2723_v38 = vcombine.low %v93_v32, %v93_v32  ;;  %v2680_v55 = vcombine.high %v47_v50, %v55_v51  ;;  %v71_v59 = vld [vmem:[%s4194_s0 + $0x158] sm:$0xff]  ;;  %v2679_v61 = vcombine.low %v47_v50, %v55_v51  ;;  %v3441_v63 = vld [vmem:[%s4195_s1 + $0x8] sm:$0xff]   ;;  %v78_v0 = vld [vmem:[%s4194_s0 + $0x190] sm:$0xff] }
   0xc   :  { %v503_v43 = vsel %vm501_vm0, %v2721_v36, 0  ;;  %v2694_v62 = vcombine.high %v62_v56, %v70_v57  ;;  %v86_v1 = vld [vmem:[%s4194_s0 + $0x1d0] sm:$0xff]  ;;  %v2696_v2 = vcombine.high %v63_v58, %v71_v59  ;;  %v79_v4 = vld [vmem:[%s4194_s0 + $0x198] sm:$0xff]  ;;  %v100_v6 = vld [vmem:[%s4196_s2] sm:$0xff]  ;;  %v2693_v8 = vcombine.low %v62_v56, %v70_v57 }
   0xd   :  { %v509_v45 = vsel %vm501_vm0, %v2723_v38, 0  ;;  %v87_v5 = vld [vmem:[%s4194_s0 + $0x1d8] sm:$0xff]  ;;  %v102_v7 = vld [vmem:[%s4196_s2 + $0x10] sm:$0xff]  ;;  %106 = vperm.xlu0 %3135, %v100_v6   ;;  %v2695_v9 = vcombine.low %v63_v58, %v71_v59  ;;  %v2710_v10 = vcombine.high %v78_v0, %v86_v1  ;;  %v2709_v14 = vcombine.low %v78_v0, %v86_v1  ;;  %v32_v15 = vld [vmem:[%s4194_s0 + $0x20] sm:$0xff] }
   0xe   :  { %555 = vmatpush1.bf16.msra.mxu0 %v2689_v27  ;;  %608 = vmatpush1.bf16.msra.mxu1 %v2691_v28  ;;  %v94_v11 = vld [vmem:[%s4194_s0 + $0x210] sm:$0xff]  ;;  %v2712_v12 = vcombine.high %v79_v4, %v87_v5  ;;  %v95_v13 = vld [vmem:[%s4194_s0 + $0x218] sm:$0xff]  ;;  %v40_v16 = vld [vmem:[%s4194_s0 + $0x60] sm:$0xff]  ;;  %v2711_v18 = vcombine.low %v79_v4, %v87_v5 }
   0xf   :  { %556 = vmatprep.subr.bf16.mxu0 %v2706_v29  ;;  %609 = vmatprep.subr.bf16.mxu1 %v2708_v30  ;;  %v101_v17 = vld [vmem:[%s4196_s2 + $0x8] sm:$0xff]  ;;  %v2726_v19 = vcombine.high %v94_v11, %v94_v11  ;;  %v2725_v20 = vcombine.low %v94_v11, %v94_v11  ;;  %v103_v21 = vld [vmem:[%s4196_s2 + $0x18] sm:$0xff]  ;;  %v2728_v22 = vcombine.high %v95_v13, %v95_v13  ;;  %v48_v26 = vld [vmem:[%s4194_s0 + $0xa0] sm:$0xff] }
  0x10   :  { %116 = vperm.xlu1 %3136, %v102_v7   ;;  %v2727_v23 = vcombine.low %v95_v13, %v95_v13  ;;  %v33_v24 = vld [vmem:[%s4194_s0 + $0x28] sm:$0xff]  ;;  %v2666_v28 = vcombine.high %v32_v15, %v40_v16  ;;  %v56_v29 = vld [vmem:[%s4194_s0 + $0xe0] sm:$0xff]  ;;  %v3542_v47 = vld [vmem:[%s4194_s0 + $0x238] sm:$0xff] }
  0x11   :  { %v41_v25 = vld [vmem:[%s4194_s0 + $0x68] sm:$0xff]  ;;  %111 = vperm.xlu0 %3135, %v101_v17   ;;  %v515_v27 = vsel %vm501_vm0, %v2725_v20, 0  ;;  %v72_v36 = vld [vmem:[%s4194_s0 + $0x160] sm:$0xff]  ;;  %v2682_v38 = vcombine.high %v48_v26, %v56_v29  ;;  %v2735_v58 = vcombine.low %v3542_v47, %v3542_v47  ;;  %v34_v6 = vld [vmem:[%s4194_s0 + $0x30] sm:$0xff] }
  0x12   :  { %557 = vmatpush1.bf16.msra.mxu0 %v2705_v33  ;;  %610 = vmatpush1.bf16.msra.mxu1 %v2707_v34  ;;  %v521_v30 = vsel %vm501_vm0, %v2727_v23, 0  ;;  %v2668_v31 = vcombine.high %v33_v24, %v41_v25  ;;  %v49_v32 = vld [vmem:[%s4194_s0 + $0xa8] sm:$0xff]  ;;  %v2665_v34 = vcombine.low %v32_v15, %v40_v16  ;;  %v96_v41 = vld [vmem:[%s4194_s0 + $0x220] sm:$0xff]  ;;  %v42_v7 = vld [vmem:[%s4194_s0 + $0x70] sm:$0xff] }
  0x13   :  { %2737 = vmatprep.subr.msk.bf16.mxu0 %vm501_vm0, %v2722_v35  ;;  %2740 = vmatprep.subr.msk.bf16.mxu1 %vm501_vm0, %v2724_v37  ;;  %v57_v33 = vld [vmem:[%s4194_s0 + $0xe8] sm:$0xff]  ;;  %v64_v35 = vld [vmem:[%s4194_s0 + $0x120] sm:$0xff]  ;;  %v2667_v37 = vcombine.low %v33_v24, %v41_v25  ;;  %v3567_v4 = vsel %vm501_vm0, %v2735_v58, 0  ;;  %v43_v11 = vld [vmem:[%s4194_s0 + $0x78] sm:$0xff]  ;;  %v2670_v15 = vcombine.high %v34_v6, %v42_v7 }
  0x14   :  { %121 = vperm.xlu1 %3136, %v103_v21   ;;  %v65_v39 = vld [vmem:[%s4194_s0 + $0x128] sm:$0xff]  ;;  %v2684_v42 = vcombine.high %v49_v32, %v57_v33  ;;  %v2683_v48 = vcombine.low %v49_v32, %v57_v33  ;;  %v2698_v50 = vcombine.high %v64_v35, %v72_v36  ;;  %v88_v51 = vld [vmem:[%s4194_s0 + $0x1e0] sm:$0xff]  ;;  %v2697_v59 = vcombine.low %v64_v35, %v72_v36  ;;  %v50_v13 = vld [vmem:[%s4194_s0 + $0xb0] sm:$0xff] }
  0x15   :  { %v73_v40 = vld [vmem:[%s4194_s0 + $0x168] sm:$0xff]  ;;  %v51_v16 = vld [vmem:[%s4194_s0 + $0xb8] sm:$0xff]  ;;  %v66_v20 = vld [vmem:[%s4194_s0 + $0x130] sm:$0xff] }
  0x16   :  { %559 = vmatpush1.bf16.msra.mxu0 %v503_v43  ;;  %612 = vmatpush1.bf16.msra.mxu1 %v509_v45  ;;  %v97_v43 = vld [vmem:[%s4194_s0 + $0x228] sm:$0xff]  ;;  %v2681_v45 = vcombine.low %v48_v26, %v56_v29  ;;  %v59_v17 = vld [vmem:[%s4194_s0 + $0xf8] sm:$0xff]  ;;  %v74_v21 = vld [vmem:[%s4194_s0 + $0x170] sm:$0xff] }
  0x17   :  { %656 = vmatprep.subr.bf16.mxu0 %v2662_v44  ;;  %709 = vmatprep.subr.bf16.mxu1 %v2664_v46  ;;  %v3532_v44 = vld [vmem:[%s4194_s0 + $0x230] sm:$0xff]  ;;  %v80_v46 = vld [vmem:[%s4194_s0 + $0x1a0] sm:$0xff]  ;;  %v89_v56 = vld [vmem:[%s4194_s0 + $0x1e8] sm:$0xff]  ;;  %v2688_v26 = vcombine.high %v51_v16, %v59_v17  ;;  %v2701_v35 = vcombine.low %v66_v20, %v74_v21 }
  0x18   :  { %v2733_v57 = vcombine.low %v3532_v44, %v3532_v44  ;;  %v2713_v5 = vcombine.low %v80_v46, %v88_v51  ;;  %v67_v24 = vld [vmem:[%s4194_s0 + $0x138] sm:$0xff]  ;;  %v90_v29 = vld [vmem:[%s4194_s0 + $0x1f0] sm:$0xff] }
  0x19   :  { %2738 = vmatmul.mubr.msk.bf16.vlgmr.msra.gmra.mrb[0].mxu0 %vm494_vm1, %v3414_v49  ;;  %2741 = vmatmul.mubr.msk.bf16.vlgmr.msra.gmra.mrb[0].mxu1 %vm494_vm1, %v3414_v49  ;;  %v75_v25 = vld [vmem:[%s4194_s0 + $0x178] sm:$0xff] }
  0x1a   :  { %657 = vmatpush1.bf16.msra.mxu0 %v2661_v52  ;;  %710 = vmatpush1.bf16.msra.mxu1 %v2663_v53  ;;  %v2700_v52 = vcombine.high %v65_v39, %v73_v40  ;;  %v81_v53 = vld [vmem:[%s4194_s0 + $0x1a8] sm:$0xff]  ;;  %v83_v32 = vld [vmem:[%s4194_s0 + $0x1b8] sm:$0xff]  ;;  %v2703_v36 = vcombine.low %v67_v24, %v75_v25 }
  0x1b   :  { %658 = vmatprep.subr.bf16.mxu0 %v2678_v54  ;;  %711 = vmatprep.subr.bf16.mxu1 %v2680_v55  ;;  %v2729_v54 = vcombine.low %v96_v41, %v96_v41  ;;  %v2731_v55 = vcombine.low %v97_v43, %v97_v43  ;;  %v91_v33 = vld [vmem:[%s4194_s0 + $0x1f8] sm:$0xff] }
  0x1c   :  { %592 = vmatprep.mubr.bf16.mxu0 %v3293_v3  ;;  %645 = vmatprep.mubr.bf16.mxu1 %v3293_v3  ;;  %v3170_v58 = vld [vmem:[%s4197_s3 + $0x98] sm:$0xff]  }
  0x1d   :  { %v527_v0 = vsel %vm501_vm0, %v2729_v54, 0  ;;  %v533_v1 = vsel %vm501_vm0, %v2731_v55, 0  ;;  %v3166_v54 = vld [vmem:[%s4197_s3 + $0x90] sm:$0xff]   ;;  %v3167_v55 = vld [vmem:[%s4197_s3 + $0x58] sm:$0xff]  }
  0x1e   :  { %659 = vmatpush1.bf16.msra.mxu0 %v2677_v60  ;;  %712 = vmatpush1.bf16.msra.mxu1 %v2679_v61  ;;  %v2699_v60 = vcombine.low %v65_v39, %v73_v40  ;;  %v2714_v61 = vcombine.high %v80_v46, %v88_v51  ;;  %v2719_v40 = vcombine.low %v83_v32, %v91_v33  ;;  %v3158_v46 = vld [vmem:[%s4197_s3 + $0x80] sm:$0xff]   ;;  %v3162_v51 = vld [vmem:[%s4197_s3 + $0x88] sm:$0xff]  }
  0x1f   :  { %660 = vmatprep.subr.bf16.mxu0 %v2694_v62  ;;  %713 = vmatprep.subr.bf16.mxu1 %v2696_v2  ;;  %v2716_v62 = vcombine.high %v81_v53, %v89_v56  ;;  %v3564_v2 = vsel %vm501_vm0, %v2733_v57, 0  ;;  %v3169_v57 = vld [vmem:[%s4197_s3 + $0x18] sm:$0xff]  }
  0x21   :  { %2739 = vmatmul.mubr.msk.bf16.gmra.mrb[4].mxu0 %vm494_vm1, %v3441_v63  ;;  %2742 = vmatmul.mubr.msk.bf16.gmra.mrb[4].mxu1 %vm494_vm1, %v3441_v63 }
  0x22   :  { %661 = vmatpush1.bf16.msra.mxu0 %v2693_v8  ;;  %714 = vmatpush1.bf16.msra.mxu1 %v2695_v9  ;;  %v2715_v8 = vcombine.low %v81_v53, %v89_v56  ;;  %v2730_v9 = vcombine.high %v96_v41, %v96_v41  ;;  %v2734_v41 = vcombine.high %v3532_v44, %v3532_v44  ;;  %v3157_v44 = vld [vmem:[%s4197_s3] sm:$0xff]   ;;  %v3164_v53 = vld [vmem:[%s4197_s3 + $0xd0] sm:$0xff]   ;;  %v3168_v56 = vld [vmem:[%s4197_s3 + $0xd8] sm:$0xff]  }
  0x23   :  { %662 = vmatprep.subr.bf16.mxu0 %v2710_v10  ;;  %715 = vmatprep.subr.bf16.mxu1 %v2712_v12  ;;  %v35_v10 = vld [vmem:[%s4194_s0 + $0x38] sm:$0xff]  ;;  %v2732_v12 = vcombine.high %v97_v43, %v97_v43  ;;  %v3155_v43 = vld [vmem:[%s4197_s3 + $0x40] sm:$0xff]  }
  0x24   :  { %688 = vmatprep.mubr.bf16.mxu0 %v3293_v3  ;;  %741 = vmatprep.mubr.bf16.mxu1 %v3293_v3 }
  0x26   :  { %663 = vmatpush1.bf16.msra.mxu0 %v2709_v14  ;;  %716 = vmatpush1.bf16.msra.mxu1 %v2711_v18  ;;  %v58_v14 = vld [vmem:[%s4194_s0 + $0xf0] sm:$0xff]  ;;  %v2672_v18 = vcombine.high %v35_v10, %v43_v11 }
  0x27   :  { %2743 = vmatprep.subr.msk.bf16.mxu0 %vm501_vm0, %v2726_v19  ;;  %2746 = vmatprep.subr.msk.bf16.mxu1 %vm501_vm0, %v2728_v22  ;;  %v2669_v19 = vcombine.low %v34_v6, %v42_v7  ;;  %v2671_v22 = vcombine.low %v35_v10, %v43_v11  ;;  %v2686_v23 = vcombine.high %v50_v13, %v58_v14  ;;  %v3181_v6 = vld [vmem:[%s4197_s3 + $0x30] sm:$0xff]   ;;  %v3185_v10 = vld [vmem:[%s4197_s3 + $0x38] sm:$0xff]  }
  0x28   :  { %v3182_v7 = vld [vmem:[%s4197_s3 + $0xb0] sm:$0xff]   ;;  %v3186_v11 = vld [vmem:[%s4197_s3 + $0xb8] sm:$0xff]  }
  0x2a   :  { %665 = vmatpush1.bf16.msra.mxu0 %v515_v27  ;;  %718 = vmatpush1.bf16.msra.mxu1 %v521_v30  ;;  %v2685_v27 = vcombine.low %v50_v13, %v58_v14  ;;  %v2687_v30 = vcombine.low %v51_v16, %v59_v17  ;;  %v3188_v13 = vld [vmem:[%s4197_s3 + $0x1c0] sm:$0xff]  }
  0x2b   :  { %762 = vmatprep.subr.bf16.mxu0 %v2666_v28  ;;  %815 = vmatprep.subr.bf16.mxu1 %v2668_v31  ;;  %v82_v28 = vld [vmem:[%s4194_s0 + $0x1b0] sm:$0xff]  ;;  %v2702_v31 = vcombine.high %v66_v20, %v74_v21 }
  0x2c   :  { %v2717_v39 = vcombine.low %v82_v28, %v90_v29 }
  0x2d   :  { %2744 = vmatmul.mubr.msk.bf16.vlgmr.msra.gmra.mrb[8].mxu0 %vm494_vm1, %v3414_v49  ;;  %2747 = vmatmul.mubr.msk.bf16.vlgmr.msra.gmra.mrb[8].mxu1 %vm494_vm1, %v3414_v49 }
  0x2e   :  { %763 = vmatpush1.bf16.msra.mxu0 %v2665_v34  ;;  %816 = vmatpush1.bf16.msra.mxu1 %v2667_v37  ;;  %v2704_v34 = vcombine.high %v67_v24, %v75_v25  ;;  %v2718_v37 = vcombine.high %v82_v28, %v90_v29 }
  0x2f   :  { %764 = vmatprep.subr.bf16.mxu0 %v2682_v38  ;;  %817 = vmatprep.subr.bf16.mxu1 %v2684_v42  ;;  %v2720_v38 = vcombine.high %v83_v32, %v91_v33  ;;  %v2736_v42 = vcombine.high %v3542_v47, %v3542_v47  ;;  %v3159_v47 = vld [vmem:[%s4197_s3 + $0x48] sm:$0xff]  }
  0x30   :  { %698 = vmatprep.mubr.bf16.mxu0 %v3293_v3  ;;  %751 = vmatprep.mubr.bf16.mxu1 %v3293_v3 }
  0x32   :  { %765 = vmatpush1.bf16.msra.mxu0 %v2681_v45  ;;  %818 = vmatpush1.bf16.msra.mxu1 %v2683_v48  ;;  %v3156_v45 = vld [vmem:[%s4197_s3 + $0xc0] sm:$0xff]   ;;  %v3160_v48 = vld [vmem:[%s4197_s3 + $0xc8] sm:$0xff]  }
  0x33   :  { %766 = vmatprep.subr.bf16.mxu0 %v2698_v50  ;;  %819 = vmatprep.subr.bf16.mxu1 %v2700_v52  ;;  %v3161_v50 = vld [vmem:[%s4197_s3 + $0x8] sm:$0xff]   ;;  %v3163_v52 = vld [vmem:[%s4197_s3 + $0x50] sm:$0xff]  }
  0x35   :  { %2745 = vmatmul.mubr.msk.bf16.gmra.mrb[12].mxu0 %vm494_vm1, %v3441_v63  ;;  %2748 = vmatmul.mubr.msk.bf16.gmra.mrb[12].mxu1 %vm494_vm1, %v3441_v63 }
  0x36   :  { %767 = vmatpush1.bf16.msra.mxu0 %v2697_v59  ;;  %820 = vmatpush1.bf16.msra.mxu1 %v2699_v60  ;;  %v3171_v59 = vld [vmem:[%s4197_s3 + $0x60] sm:$0xff]  }
  0x37   :  { %768 = vmatprep.subr.bf16.mxu0 %v2714_v61  ;;  %821 = vmatprep.subr.bf16.mxu1 %v2716_v62  ;;  %v3172_v60 = vld [vmem:[%s4197_s3 + $0xe0] sm:$0xff]   ;;  %v3175_v62 = vld [vmem:[%s4197_s3 + $0x68] sm:$0xff]  }
  0x38   :  { %794 = vmatprep.mubr.bf16.mxu0 %v3293_v3  ;;  %847 = vmatprep.mubr.bf16.mxu1 %v3293_v3  ;;  %v3174_v61 = vld [vmem:[%s4197_s3 + $0xa0] sm:$0xff]  }
  0x3a   :  { %769 = vmatpush1.bf16.msra.mxu0 %v2713_v5  ;;  %822 = vmatpush1.bf16.msra.mxu1 %v2715_v8  ;;  %v3180_v5 = vld [vmem:[%s4197_s3 + $0xf0] sm:$0xff]   ;;  %v3183_v8 = vld [vmem:[%s4197_s3 + $0x78] sm:$0xff]  }
  0x3b   :  { %2749 = vmatprep.subr.msk.bf16.mxu0 %vm501_vm0, %v2730_v9  ;;  %2752 = vmatprep.subr.msk.bf16.mxu1 %vm501_vm0, %v2732_v12  ;;  %v3184_v9 = vld [vmem:[%s4197_s3 + $0xf8] sm:$0xff]   ;;  %v3187_v12 = vld [vmem:[%s4197_s3 + $0x140] sm:$0xff]  }
  0x3e   :  { %771 = vmatpush1.bf16.msra.mxu0 %v527_v0  ;;  %824 = vmatpush1.bf16.msra.mxu1 %v533_v1  ;;  %v3176_v0 = vld [vmem:[%s4197_s3 + $0xe8] sm:$0xff]  }
  0x3f   :  { %868 = vmatprep.subr.bf16.mxu0 %v2670_v15  ;;  %921 = vmatprep.subr.bf16.mxu1 %v2672_v18  ;;  %v3177_v1 = vld [vmem:[%s4197_s3 + $0x28] sm:$0xff]  }
  0x41   :  { %2750 = vmatmul.mubr.msk.bf16.vlgmr.msra.gmra.mrb[16].mxu0 %vm494_vm1, %v3414_v49  ;;  %2753 = vmatmul.mubr.msk.bf16.vlgmr.msra.gmra.mrb[16].mxu1 %vm494_vm1, %v3414_v49 }
  0x42   :  { %869 = vmatpush1.bf16.msra.mxu0 %v2669_v19  ;;  %922 = vmatpush1.bf16.msra.mxu1 %v2671_v22 }
  0x43   :  { %870 = vmatprep.subr.bf16.mxu0 %v2686_v23  ;;  %923 = vmatprep.subr.bf16.mxu1 %v2688_v26 }
  0x44   :  { %804 = vmatprep.mubr.bf16.mxu0 %v3293_v3  ;;  %857 = vmatprep.mubr.bf16.mxu1 %v3293_v3 }
  0x46   :  { %871 = vmatpush1.bf16.msra.mxu0 %v2685_v27  ;;  %924 = vmatpush1.bf16.msra.mxu1 %v2687_v30 }
  0x47   :  { %872 = vmatprep.subr.bf16.mxu0 %v2702_v31  ;;  %925 = vmatprep.subr.bf16.mxu1 %v2704_v34 }
  0x49   :  { %2751 = vmatmul.mubr.msk.bf16.gmra.mrb[20].mxu0 %vm494_vm1, %v3441_v63  ;;  %2754 = vmatmul.mubr.msk.bf16.gmra.mrb[20].mxu1 %vm494_vm1, %v3441_v63 }
  0x4a   :  { %873 = vmatpush1.bf16.msra.mxu0 %v2701_v35  ;;  %926 = vmatpush1.bf16.msra.mxu1 %v2703_v36 }
  0x4b   :  { %874 = vmatprep.subr.bf16.mxu0 %v2718_v37  ;;  %927 = vmatprep.subr.bf16.mxu1 %v2720_v38 }
  0x4c   :  { %900 = vmatprep.mubr.bf16.mxu0 %v3293_v3  ;;  %953 = vmatprep.mubr.bf16.mxu1 %v3293_v3 }
  0x4e   :  { %875 = vmatpush1.bf16.msra.mxu0 %v2717_v39  ;;  %928 = vmatpush1.bf16.msra.mxu1 %v2719_v40 }
  0x4f   :  { %2755 = vmatprep.subr.msk.bf16.mxu0 %vm501_vm0, %v2734_v41  ;;  %2758 = vmatprep.subr.msk.bf16.mxu1 %vm501_vm0, %v2736_v42 }
  0x52   :  { %877 = vmatpush1.bf16.msra.mxu0 %v3564_v2  ;;  %930 = vmatpush1.bf16.msra.mxu1 %v3567_v4  ;;  %v3178_v2 = vld [vmem:[%s4197_s3 + $0xa8] sm:$0xff]   ;;  %v3179_v4 = vld [vmem:[%s4197_s3 + $0x70] sm:$0xff]  }
  0x53   :  { %2897 = vmatprep.subr.bf16.mxu0 %v3155_v43  ;;  %2925 = vmatprep.subr.bf16.mxu1 %v3156_v45  ;;  %v3189_v45 = vld [vmem:[%s4197_s3 + $0x100] sm:$0xff]  }
  0x55   :  { %2756 = vmatmul.mubr.msk.bf16.vlgmr.msra.gmra.mrb[24].mxu0 %vm494_vm1, %v3414_v49  ;;  %2759 = vmatmul.mubr.msk.bf16.vlgmr.msra.gmra.mrb[24].mxu1 %vm494_vm1, %v3414_v49  ;;  %v3165_v49 = vld [vmem:[%s4197_s3 + $0x10] sm:$0xff]  }
  0x56   :  { %910 = vmatprep.mubr.bf16.mxu0 %v3293_v3  ;;  %963 = vmatprep.mubr.bf16.mxu1 %v3293_v3 }
  0x57   :  { %2898 = vmatpush3.bf16.msra.mxu0 %v3157_v44  ;;  %2926 = vmatpush3.bf16.msra.mxu1 %v3158_v46 }
  0x58   :  { %2899 = vmatprep.subr.bf16.mxu0 %v3159_v47  ;;  %2927 = vmatprep.subr.bf16.mxu1 %v3160_v48  ;;  %v3190_v48 = vld [vmem:[%s4197_s3 + $0x180] sm:$0xff]  }
  0x5b   :  { %2900 = vmatpush3.bf16.msra.mxu0 %v3161_v50  ;;  %2928 = vmatpush3.bf16.msra.mxu1 %v3162_v51  ;;  %v3191_v50 = vld [vmem:[%s4197_s3 + $0x148] sm:$0xff]  }
  0x5c   :  { %2901 = vmatprep.subr.bf16.mxu0 %v3163_v52  ;;  %2929 = vmatprep.subr.bf16.mxu1 %v3164_v53 }
  0x5d   :  { %2757 = vmatmul.mubr.msk.bf16.gmra.mrb[28].mxu0 %vm494_vm1, %v3441_v63  ;;  %2760 = vmatmul.mubr.msk.bf16.gmra.mrb[28].mxu1 %vm494_vm1, %v3441_v63  ;;  %v3173_v63 = vld [vmem:[%s4197_s3 + $0x20] sm:$0xff]  }
  0x5f   :  { %2902 = vmatpush3.bf16.msra.mxu0 %v3165_v49  ;;  %2930 = vmatpush3.bf16.msra.mxu1 %v3166_v54  ;;  %v3192_v49 = vld [vmem:[%s4197_s3 + $0x1c8] sm:$0xff]  }
  0x60   :  { %2903 = vmatprep.subr.bf16.mxu0 %v3167_v55  ;;  %2931 = vmatprep.subr.bf16.mxu1 %v3168_v56 }
  0x63   :  { %2904 = vmatpush3.bf16.msra.mxu0 %v3169_v57  ;;  %2932 = vmatpush3.bf16.msra.mxu1 %v3170_v58 }
  0x64   :  { %2905 = vmatprep.subr.bf16.mxu0 %v3171_v59  ;;  %2933 = vmatprep.subr.bf16.mxu1 %v3172_v60 }
  0x67   :  { %2906 = vmatpush3.bf16.msra.mxu0 %v3173_v63  ;;  %2934 = vmatpush3.bf16.msra.mxu1 %v3174_v61 }
  0x68   :  { %2907 = vmatprep.subr.bf16.mxu0 %v3175_v62  ;;  %2935 = vmatprep.subr.bf16.mxu1 %v3176_v0  ;;  %v3193_v62 = vld [vmem:[%s4197_s3 + $0x108] sm:$0xff]  }
  0x6b   :  { %2908 = vmatpush3.bf16.msra.mxu0 %v3177_v1  ;;  %2936 = vmatpush3.bf16.msra.mxu1 %v3178_v2 }
  0x6c   :  { %2909 = vmatprep.subr.bf16.mxu0 %v3179_v4  ;;  %2937 = vmatprep.subr.bf16.mxu1 %v3180_v5 }
  0x6f   :  { %2910 = vmatpush3.bf16.msra.mxu0 %v3181_v6  ;;  %2938 = vmatpush3.bf16.msra.mxu1 %v3182_v7  ;;  %v3194_v6 = vld [vmem:[%s4197_s3 + $0x188] sm:$0xff]  }
  0x70   :  { %2911 = vmatprep.subr.bf16.mxu0 %v3183_v8  ;;  %2939 = vmatprep.subr.bf16.mxu1 %v3184_v9  ;;  %v3195_v8 = vld [vmem:[%s4197_s3 + $0x150] sm:$0xff]  }
  0x73   :  { %2912 = vmatpush3.bf16.msra.mxu0 %v3185_v10  ;;  %2940 = vmatpush3.bf16.msra.mxu1 %v3186_v11  ;;  %v3196_v11 = vld [vmem:[%s4197_s3 + $0x1d0] sm:$0xff]  }
  0x74   :  { %2953 = vmatprep.subr.bf16.mxu0 %v3187_v12  ;;  %2981 = vmatprep.subr.bf16.mxu1 %v3188_v13 }
  0x8c   :  { %v3755_v14 = vpop.permute.xlu0 %106 }
  0x8f   :  { %v3757_v15 = vpop.permute.xlu1 %116 }
  0x90   :  { %v3759_v16 = vpop.permute.xlu0 %111 }
  0x93   :  { %v3772_v46 = vpop.permute.xlu1 %121 }
  0xec   :  { %v584_v17 = vpop.f32.mrb[0].mxu0  ;;  %v637_v19 = vpop.f32.mrb[0].mxu1 }
  0xed   :  { %v585_v18 = vadd.f32 %v584_v17, %v3755_v14  ;;  %v586_v20 = vpop.f32.mrb[1].mxu0  ;;  %v638_v21 = vadd.f32 %v637_v19, %v3755_v14  ;;  %v639_v23 = vpop.f32.mrb[1].mxu1 }
  0xee   :  { %v587_v22 = vadd.f32 %v586_v20, %v3755_v14  ;;  %v588_v24 = vpop.f32.mrb[2].mxu0  ;;  %v640_v25 = vadd.f32 %v639_v23, %v3755_v14  ;;  %v641_v27 = vpop.f32.mrb[2].mxu1  ;;  %v3197_v20 = vld [vmem:[%s4197_s3 + $0x110] sm:$0xff]  }
  0xef   :  { %v589_v26 = vadd.f32 %v588_v24, %v3759_v16  ;;  %v590_v28 = vpop.f32.mrb[3].mxu0  ;;  %v642_v29 = vadd.f32 %v641_v27, %v3759_v16  ;;  %v643_v31 = vpop.f32.mrb[3].mxu1  ;;  %v974_v32 = vmax.f32 %v585_v18, 0.0  ;;  %v976_v35 = vmax.f32 %v638_v21, 0.0  ;;  %v3198_v23 = vld [vmem:[%s4197_s3 + $0x190] sm:$0xff]   ;;  %v3199_v24 = vld [vmem:[%s4197_s3 + $0x158] sm:$0xff]  }
  0xf0   :  { %v591_v30 = vadd.f32 %v590_v28, %v3759_v16  ;;  %v644_v34 = vadd.f32 %v643_v31, %v3759_v16  ;;  %v975_v36 = vmax.f32 %v587_v22, 0.0  ;;  %v977_v39 = vmax.f32 %v640_v25, 0.0  ;;  %v3200_v25 = vld [vmem:[%s4197_s3 + $0x1d8] sm:$0xff]  }
  0xf1   :  { %v990_v33 = vmax.f32 %v589_v26, 0.0  ;;  %v992_v37 = vmax.f32 %v642_v29, 0.0  ;;  %v3201_v27 = vld [vmem:[%s4197_s3 + $0x118] sm:$0xff]  }
  0xf2   :  { %v991_v38 = vmax.f32 %v591_v30, 0.0  ;;  %v993_v41 = vmax.f32 %v644_v34, 0.0  ;;  %v3202_v31 = vld [vmem:[%s4197_s3 + $0x198] sm:$0xff]  }
  0xf3   :  { %v1038_v40 = vpack.c.bf16 %v990_v33, %v974_v32  ;;  %v1040_v42 = vpack.c.bf16 %v992_v37, %v976_v35  ;;  %v3203_v32 = vld [vmem:[%s4197_s3 + $0x160] sm:$0xff]  }
  0xf4   :  { %v1039_v43 = vpack.c.bf16 %v991_v38, %v975_v36  ;;  %v594_v44 = vpop.f32.mrb[4].mxu0  ;;  %v1041_v47 = vpack.c.bf16 %v993_v41, %v977_v39  ;;  %v647_v52 = vpop.f32.mrb[4].mxu1  ;;  %v3204_v37 = vld [vmem:[%s4197_s3 + $0x1e0] sm:$0xff]  }
  0xf5   :  { %v595_v51 = vadd.f32 %v594_v44, %v3757_v15  ;;  %v596_v53 = vpop.f32.mrb[5].mxu0  ;;  %v648_v54 = vadd.f32 %v647_v52, %v3757_v15  ;;  %v649_v56 = vpop.f32.mrb[5].mxu1  ;;  %v3205_v44 = vld [vmem:[%s4197_s3 + $0x120] sm:$0xff]   ;;  %v3207_v52 = vld [vmem:[%s4197_s3 + $0x168] sm:$0xff]  }
  0xf6   :  { %2126 = vmatprep.mubr.bf16.mxu0 %v1039_v43  ;;  %v597_v55 = vadd.f32 %v596_v53, %v3757_v15  ;;  %v598_v57 = vpop.f32.mrb[6].mxu0  ;;  %2175 = vmatprep.mubr.bf16.mxu1 %v1041_v47  ;;  %v650_v59 = vadd.f32 %v649_v56, %v3757_v15  ;;  %v651_v60 = vpop.f32.mrb[6].mxu1  ;;  %v3208_v56 = vld [vmem:[%s4197_s3 + $0x1e8] sm:$0xff]  }
  0xf7   :  { %2127 = vmatmul.mubr.bf16.vlgmr.msra.gmra.mrb[32].mxu0 %v1038_v40  ;;  %v1006_v58 = vmax.f32 %v595_v51, 0.0  ;;  %v600_v63 = vpop.f32.mrb[7].mxu0  ;;  %v599_v61 = vadd.f32 %v598_v57, %v3772_v46  ;;  %2176 = vmatmul.mubr.bf16.vlgmr.msra.gmra.mrb[32].mxu1 %v1040_v42  ;;  %v1008_v0 = vmax.f32 %v648_v54, 0.0  ;;  %v653_v4 = vpop.f32.mrb[7].mxu1  ;;  %v652_v5 = vadd.f32 %v651_v60, %v3772_v46  ;;  %v3206_v51 = vld [vmem:[%s4197_s3 + $0x1a0] sm:$0xff]  }
  0xf8   :  { %2954 = vmatpush3.bf16.msra.mxu0 %v3189_v45  ;;  %v1007_v1 = vmax.f32 %v597_v55, 0.0  ;;  %v601_v2 = vadd.f32 %v600_v63, %v3772_v46  ;;  %2982 = vmatpush3.bf16.msra.mxu1 %v3190_v48  ;;  %v1009_v7 = vmax.f32 %v650_v59, 0.0  ;;  %v654_v9 = vadd.f32 %v653_v4, %v3772_v46 }
  0xf9   :  { %2955 = vmatprep.subr.bf16.mxu0 %v3191_v50  ;;  %v1022_v10 = vmax.f32 %v599_v61, 0.0  ;;  %2983 = vmatprep.subr.bf16.mxu1 %v3192_v49  ;;  %v1024_v13 = vmax.f32 %v652_v5, 0.0  ;;  %v3210_v5 = vld [vmem:[%s4197_s3 + $0x1a8] sm:$0xff]  }
  0xfa   :  { %v1023_v12 = vmax.f32 %v601_v2, 0.0  ;;  %v1025_v17 = vmax.f32 %v654_v9, 0.0 }
  0xfb   :  { %v1054_v18 = vpack.c.bf16 %v1022_v10, %v1006_v58  ;;  %v1056_v21 = vpack.c.bf16 %v1024_v13, %v1008_v0 }
  0xfc   :  { %2956 = vmatpush3.bf16.msra.mxu0 %v3193_v62  ;;  %v1055_v19 = vpack.c.bf16 %v1023_v12, %v1007_v1  ;;  %2984 = vmatpush3.bf16.msra.mxu1 %v3194_v6  ;;  %v1057_v22 = vpack.c.bf16 %v1025_v17, %v1009_v7  ;;  %v3209_v62 = vld [vmem:[%s4197_s3 + $0x128] sm:$0xff]   ;;  %v3211_v6 = vld [vmem:[%s4197_s3 + $0x170] sm:$0xff]  }
  0xfd   :  { %2957 = vmatprep.subr.bf16.mxu0 %v3195_v8  ;;  %2985 = vmatprep.subr.bf16.mxu1 %v3196_v11  ;;  %v3212_v11 = vld [vmem:[%s4197_s3 + $0x1f0] sm:$0xff]  }
  0xfe   :  { %2134 = vmatprep.mubr.bf16.mxu0 %v1055_v19  ;;  %2183 = vmatprep.mubr.bf16.mxu1 %v1057_v22  ;;  %v3213_v22 = vld [vmem:[%s4197_s3 + $0x130] sm:$0xff]  }
  0xff   :  { %2135 = vmatmul.mubr.bf16.gmra.mrb[36].mxu0 %v1054_v18  ;;  %2184 = vmatmul.mubr.bf16.gmra.mrb[36].mxu1 %v1056_v21 }
 0x100   :  { %2958 = vmatpush3.bf16.msra.mxu0 %v3197_v20  ;;  %v690_v26 = vpop.f32.mrb[8].mxu0  ;;  %2986 = vmatpush3.bf16.msra.mxu1 %v3198_v23  ;;  %v743_v29 = vpop.f32.mrb[8].mxu1 }
 0x101   :  { %v691_v28 = vadd.f32 %v690_v26, %v3755_v14  ;;  %v692_v30 = vpop.f32.mrb[9].mxu0  ;;  %2959 = vmatprep.subr.bf16.mxu0 %v3199_v24  ;;  %v744_v33 = vadd.f32 %v743_v29, %v3755_v14  ;;  %v745_v35 = vpop.f32.mrb[9].mxu1  ;;  %2987 = vmatprep.subr.bf16.mxu1 %v3200_v25  ;;  %v3214_v26 = vld [vmem:[%s4197_s3 + $0x1b0] sm:$0xff]  }
 0x102   :  { %v693_v34 = vadd.f32 %v692_v30, %v3755_v14  ;;  %v694_v36 = vpop.f32.mrb[10].mxu0  ;;  %v746_v38 = vadd.f32 %v745_v35, %v3755_v14  ;;  %v747_v40 = vpop.f32.mrb[10].mxu1 }
 0x103   :  { %v695_v39 = vadd.f32 %v694_v36, %v3759_v16  ;;  %v696_v41 = vpop.f32.mrb[11].mxu0  ;;  %v748_v42 = vadd.f32 %v747_v40, %v3759_v16  ;;  %v749_v45 = vpop.f32.mrb[11].mxu1  ;;  %v978_v47 = vmax.f32 %v691_v28, 0.0  ;;  %v980_v53 = vmax.f32 %v744_v33, 0.0  ;;  %v3218_v40 = vld [vmem:[%s4197_s3 + $0x1b8] sm:$0xff]  }
 0x104   :  { %v697_v43 = vadd.f32 %v696_v41, %v3759_v16  ;;  %2960 = vmatpush3.bf16.msra.mxu0 %v3201_v27  ;;  %v750_v50 = vadd.f32 %v749_v45, %v3759_v16  ;;  %2988 = vmatpush3.bf16.msra.mxu1 %v3202_v31  ;;  %v979_v49 = vmax.f32 %v693_v34, 0.0  ;;  %v981_v57 = vmax.f32 %v746_v38, 0.0  ;;  %v3215_v27 = vld [vmem:[%s4197_s3 + $0x178] sm:$0xff]   ;;  %v3219_v41 = vld [vmem:[%s4197_s3 + $0x240] sm:$0xff]  }
 0x105   :  { %v994_v48 = vmax.f32 %v695_v39, 0.0  ;;  %2961 = vmatprep.subr.bf16.mxu0 %v3203_v32  ;;  %v996_v54 = vmax.f32 %v748_v42, 0.0  ;;  %2989 = vmatprep.subr.bf16.mxu1 %v3204_v37  ;;  %v3216_v32 = vld [vmem:[%s4197_s3 + $0x1f8] sm:$0xff]   ;;  %v3220_v42 = vld [vmem:[%s4197_s3 + $0x2c0] sm:$0xff]  }
 0x106   :  { %v995_v55 = vmax.f32 %v697_v43, 0.0  ;;  %v997_v59 = vmax.f32 %v750_v50, 0.0  ;;  %v3217_v38 = vld [vmem:[%s4197_s3 + $0x138] sm:$0xff]  }
 0x107   :  { %v3847_v58 = vpack.c.bf16 %v994_v48, %v978_v47  ;;  %v3849_v60 = vpack.c.bf16 %v996_v54, %v980_v53  ;;  %v3221_v48 = vld [vmem:[%s4197_s3 + $0x200] sm:$0xff]   ;;  %v3223_v54 = vld [vmem:[%s4197_s3 + $0x248] sm:$0xff]  }
 0x108   :  { %v1043_v63 = vpack.c.bf16 %v995_v55, %v979_v49  ;;  %2962 = vmatpush3.bf16.msra.mxu0 %v3205_v44  ;;  %v700_v61 = vpop.f32.mrb[12].mxu0  ;;  %v1045_v0 = vpack.c.bf16 %v997_v59, %v981_v57  ;;  %2990 = vmatpush3.bf16.msra.mxu1 %v3206_v51  ;;  %v753_v2 = vpop.f32.mrb[12].mxu1  ;;  %v3222_v49 = vld [vmem:[%s4197_s3 + $0x280] sm:$0xff]  }
 0x109   :  { %v701_v1 = vadd.f32 %v700_v61, %v3757_v15  ;;  %v702_v4 = vpop.f32.mrb[13].mxu0  ;;  %2963 = vmatprep.subr.bf16.mxu0 %v3207_v52  ;;  %v754_v7 = vadd.f32 %v753_v2, %v3757_v15  ;;  %v755_v9 = vpop.f32.mrb[13].mxu1  ;;  %2991 = vmatprep.subr.bf16.mxu1 %v3208_v56 }
 0x10a   :  { %v703_v8 = vadd.f32 %v702_v4, %v3757_v15  ;;  %v704_v10 = vpop.f32.mrb[14].mxu0  ;;  %2224 = vmatprep.mubr.bf16.mxu0 %v1043_v63  ;;  %v756_v12 = vadd.f32 %v755_v9, %v3757_v15  ;;  %v757_v17 = vpop.f32.mrb[14].mxu1  ;;  %2273 = vmatprep.mubr.bf16.mxu1 %v1045_v0  ;;  %v3224_v63 = vld [vmem:[%s4197_s3 + $0x2c8] sm:$0xff]   ;;  %v3227_v9 = vld [vmem:[%s4197_s3 + $0x250] sm:$0xff]  }
 0x10b   :  { %v705_v13 = vadd.f32 %v704_v10, %v3772_v46  ;;  %v706_v18 = vpop.f32.mrb[15].mxu0  ;;  %v758_v19 = vadd.f32 %v757_v17, %v3772_v46  ;;  %v759_v21 = vpop.f32.mrb[15].mxu1  ;;  %v1010_v23 = vmax.f32 %v701_v1, 0.0  ;;  %v1012_v28 = vmax.f32 %v754_v7, 0.0 }
 0x10c   :  { %v707_v20 = vadd.f32 %v706_v18, %v3772_v46  ;;  %2964 = vmatpush3.bf16.msra.mxu0 %v3209_v62  ;;  %v760_v25 = vadd.f32 %v759_v21, %v3772_v46  ;;  %2992 = vmatpush3.bf16.msra.mxu1 %v3210_v5  ;;  %v1011_v29 = vmax.f32 %v703_v8, 0.0  ;;  %v1013_v33 = vmax.f32 %v756_v12, 0.0 }
 0x10d   :  { %v1026_v24 = vmax.f32 %v705_v13, 0.0  ;;  %2965 = vmatprep.subr.bf16.mxu0 %v3211_v6  ;;  %v1028_v30 = vmax.f32 %v758_v19, 0.0  ;;  %2993 = vmatprep.subr.bf16.mxu1 %v3212_v11  ;;  %v3228_v13 = vld [vmem:[%s4197_s3 + $0x2d0] sm:$0xff]  }
 0x10e   :  { %v1027_v31 = vmax.f32 %v707_v20, 0.0  ;;  %v1029_v35 = vmax.f32 %v760_v25, 0.0 }
 0x10f   :  { %v3883_v34 = vpack.c.bf16 %v1026_v24, %v1010_v23  ;;  %v3885_v36 = vpack.c.bf16 %v1028_v30, %v1012_v28  ;;  %v3229_v24 = vld [vmem:[%s4197_s3 + $0x210] sm:$0xff]   ;;  %v3231_v30 = vld [vmem:[%s4197_s3 + $0x258] sm:$0xff]  }
 0x110   :  { %v1059_v37 = vpack.c.bf16 %v1027_v31, %v1011_v29  ;;  %2966 = vmatpush3.bf16.msra.mxu0 %v3213_v22  ;;  %v1061_v39 = vpack.c.bf16 %v1029_v35, %v1013_v33  ;;  %2994 = vmatpush3.bf16.msra.mxu1 %v3214_v26  ;;  %v3230_v29 = vld [vmem:[%s4197_s3 + $0x290] sm:$0xff]  }
 0x111   :  { %2967 = vmatprep.subr.bf16.mxu0 %v3215_v27  ;;  %2995 = vmatprep.subr.bf16.mxu1 %v3216_v32 }
 0x114   :  { %2968 = vmatpush3.bf16.msra.mxu0 %v3217_v38  ;;  %v796_v43 = vpop.f32.mrb[16].mxu0  ;;  %2996 = vmatpush3.bf16.msra.mxu1 %v3218_v40  ;;  %v849_v44 = vpop.f32.mrb[16].mxu1 }
 0x115   :  { %v797_v45 = vadd.f32 %v796_v43, %v3755_v14  ;;  %v798_v47 = vpop.f32.mrb[17].mxu0  ;;  %3009 = vmatprep.subr.bf16.mxu0 %v3219_v41  ;;  %v850_v50 = vadd.f32 %v849_v44, %v3755_v14  ;;  %v851_v52 = vpop.f32.mrb[17].mxu1  ;;  %3037 = vmatprep.subr.bf16.mxu1 %v3220_v42 }
 0x116   :  { %v799_v51 = vadd.f32 %v798_v47, %v3755_v14  ;;  %v800_v53 = vpop.f32.mrb[18].mxu0  ;;  %v852_v55 = vadd.f32 %v851_v52, %v3755_v14  ;;  %v853_v57 = vpop.f32.mrb[18].mxu1 }
 0x117   :  { %v801_v56 = vadd.f32 %v800_v53, %v3759_v16  ;;  %2225 = vmatmul.mubr.bf16.vlgmr.msra.gmra.mrb[40].mxu0 %v3847_v58  ;;  %v802_v59 = vpop.f32.mrb[19].mxu0  ;;  %v854_v61 = vadd.f32 %v853_v57, %v3759_v16  ;;  %2274 = vmatmul.mubr.bf16.vlgmr.msra.gmra.mrb[40].mxu1 %v3849_v60  ;;  %v855_v0 = vpop.f32.mrb[19].mxu1  ;;  %v982_v1 = vmax.f32 %v797_v45, 0.0  ;;  %v3225_v58 = vld [vmem:[%s4197_s3 + $0x208] sm:$0xff]   ;;  %v984_v5 = vmax.f32 %v850_v50, 0.0  ;;  %v3235_v50 = vld [vmem:[%s4197_s3 + $0x260] sm:$0xff]  }
 0x118   :  { %v803_v62 = vadd.f32 %v802_v59, %v3759_v16  ;;  %2232 = vmatprep.mubr.bf16.mxu0 %v1059_v37  ;;  %v856_v4 = vadd.f32 %v855_v0, %v3759_v16  ;;  %2281 = vmatprep.mubr.bf16.mxu1 %v1061_v39  ;;  %v983_v6 = vmax.f32 %v799_v51, 0.0  ;;  %v3226_v60 = vld [vmem:[%s4197_s3 + $0x288] sm:$0xff]   ;;  %v985_v10 = vmax.f32 %v852_v55, 0.0  ;;  %v3232_v37 = vld [vmem:[%s4197_s3 + $0x2d8] sm:$0xff]   ;;  %v3237_v57 = vld [vmem:[%s4197_s3 + $0x220] sm:$0xff]  }
 0x119   :  { %v998_v2 = vmax.f32 %v801_v56, 0.0  ;;  %3010 = vmatpush3.bf16.msra.mxu0 %v3221_v48  ;;  %v1000_v7 = vmax.f32 %v854_v61, 0.0  ;;  %3038 = vmatpush3.bf16.msra.mxu1 %v3222_v49  ;;  %v3236_v49 = vld [vmem:[%s4197_s3 + $0x2e0] sm:$0xff]   ;;  %v3240_v61 = vld [vmem:[%s4197_s3 + $0x2e8] sm:$0xff]  }
 0x11a   :  { %v999_v8 = vmax.f32 %v803_v62, 0.0  ;;  %3011 = vmatprep.subr.bf16.mxu0 %v3223_v54  ;;  %v1001_v12 = vmax.f32 %v856_v4, 0.0  ;;  %3039 = vmatprep.subr.bf16.mxu1 %v3224_v63  ;;  %v3238_v59 = vld [vmem:[%s4197_s3 + $0x2a0] sm:$0xff]   ;;  %v3239_v63 = vld [vmem:[%s4197_s3 + $0x268] sm:$0xff]  }
 0x11b   :  { %v3930_v11 = vpack.c.bf16 %v998_v2, %v982_v1  ;;  %v3935_v17 = vpack.c.bf16 %v1000_v7, %v984_v5  ;;  %v3241_v4 = vld [vmem:[%s4197_s3 + $0x228] sm:$0xff]  }
 0x11c   :  { %v1047_v18 = vpack.c.bf16 %v999_v8, %v983_v6  ;;  %v806_v19 = vpop.f32.mrb[20].mxu0  ;;  %v1049_v20 = vpack.c.bf16 %v1001_v12, %v985_v10  ;;  %v859_v22 = vpop.f32.mrb[20].mxu1  ;;  %v3242_v8 = vld [vmem:[%s4197_s3 + $0x2a8] sm:$0xff]  }
 0x11d   :  { %3012 = vmatpush3.bf16.msra.mxu0 %v3225_v58  ;;  %v807_v21 = vadd.f32 %v806_v19, %v3757_v15  ;;  %v808_v23 = vpop.f32.mrb[21].mxu0  ;;  %3040 = vmatpush3.bf16.msra.mxu1 %v3226_v60  ;;  %v860_v25 = vadd.f32 %v859_v22, %v3757_v15  ;;  %v861_v27 = vpop.f32.mrb[21].mxu1  ;;  %v3243_v60 = vld [vmem:[%s4197_s3 + $0x270] sm:$0xff]  }
 0x11e   :  { %v809_v26 = vadd.f32 %v808_v23, %v3757_v15  ;;  %v810_v28 = vpop.f32.mrb[22].mxu0  ;;  %3013 = vmatprep.subr.bf16.mxu0 %v3227_v9  ;;  %v862_v31 = vadd.f32 %v861_v27, %v3757_v15  ;;  %v863_v33 = vpop.f32.mrb[22].mxu1  ;;  %3041 = vmatprep.subr.bf16.mxu1 %v3228_v13 }
 0x11f   :  { %v811_v32 = vadd.f32 %v810_v28, %v3772_v46  ;;  %2233 = vmatmul.mubr.bf16.gmra.mrb[44].mxu0 %v3883_v34  ;;  %v812_v35 = vpop.f32.mrb[23].mxu0  ;;  %v864_v38 = vadd.f32 %v863_v33, %v3772_v46  ;;  %2282 = vmatmul.mubr.bf16.gmra.mrb[44].mxu1 %v3885_v36  ;;  %v865_v40 = vpop.f32.mrb[23].mxu1  ;;  %v1014_v41 = vmax.f32 %v807_v21, 0.0  ;;  %v3233_v34 = vld [vmem:[%s4197_s3 + $0x218] sm:$0xff]   ;;  %v1016_v45 = vmax.f32 %v860_v25, 0.0 }
 0x120   :  { %v813_v39 = vadd.f32 %v812_v35, %v3772_v46  ;;  %2322 = vmatprep.mubr.bf16.mxu0 %v1047_v18  ;;  %v866_v43 = vadd.f32 %v865_v40, %v3772_v46  ;;  %2371 = vmatprep.mubr.bf16.mxu1 %v1049_v20  ;;  %v1015_v44 = vmax.f32 %v809_v26, 0.0  ;;  %v3234_v36 = vld [vmem:[%s4197_s3 + $0x298] sm:$0xff]   ;;  %v1017_v51 = vmax.f32 %v862_v31, 0.0  ;;  %v3244_v18 = vld [vmem:[%s4197_s3 + $0x2f0] sm:$0xff]  }
 0x121   :  { %v1030_v42 = vmax.f32 %v811_v32, 0.0  ;;  %3014 = vmatpush3.bf16.msra.mxu0 %v3229_v24  ;;  %v1032_v47 = vmax.f32 %v864_v38, 0.0  ;;  %3042 = vmatpush3.bf16.msra.mxu1 %v3230_v29  ;;  %v3246_v29 = vld [vmem:[%s4197_s3 + $0x2b0] sm:$0xff]   ;;  %v3248_v33 = vld [vmem:[%s4197_s3 + $0x2f8] sm:$0xff]  }
 0x122   :  { %v1031_v48 = vmax.f32 %v813_v39, 0.0  ;;  %3015 = vmatprep.subr.bf16.mxu0 %v3231_v30  ;;  %v1033_v53 = vmax.f32 %v866_v43, 0.0  ;;  %3043 = vmatprep.subr.bf16.mxu1 %v3232_v37  ;;  %v3247_v30 = vld [vmem:[%s4197_s3 + $0x278] sm:$0xff]  }
 0x123   :  { %v3968_v52 = vpack.c.bf16 %v1030_v42, %v1014_v41  ;;  %v3973_v54 = vpack.c.bf16 %v1032_v47, %v1016_v45  ;;  %v3249_v43 = vld [vmem:[%s4197_s3 + $0x238] sm:$0xff]  }
 0x124   :  { %v3975_v55 = vpack.c.bf16 %v1031_v48, %v1015_v44  ;;  %v3977_v56 = vpack.c.bf16 %v1033_v53, %v1017_v51  ;;  %v3250_v48 = vld [vmem:[%s4197_s3 + $0x2b8] sm:$0xff]  }
 0x125   :  { %3016 = vmatpush3.bf16.msra.mxu0 %v3233_v34  ;;  %3044 = vmatpush3.bf16.msra.mxu1 %v3234_v36  ;;  %v3251_v36 = vld [vmem:[%s4197_s3 + $0x340] sm:$0xff]  }
 0x126   :  { %3017 = vmatprep.subr.bf16.mxu0 %v3235_v50  ;;  %3045 = vmatprep.subr.bf16.mxu1 %v3236_v49 }
 0x128   :  { %v902_v62 = vpop.f32.mrb[24].mxu0  ;;  %v955_v1 = vpop.f32.mrb[24].mxu1 }
 0x129   :  { %3018 = vmatpush3.bf16.msra.mxu0 %v3237_v57  ;;  %v903_v0 = vadd.f32 %v902_v62, %v3755_v14  ;;  %v904_v2 = vpop.f32.mrb[25].mxu0  ;;  %3046 = vmatpush3.bf16.msra.mxu1 %v3238_v59  ;;  %v956_v58 = vadd.f32 %v955_v1, %v3755_v14  ;;  %v957_v6 = vpop.f32.mrb[25].mxu1  ;;  %v3252_v57 = vld [vmem:[%s4197_s3 + $0x3c0] sm:$0xff]  }
 0x12a   :  { %v905_v5 = vadd.f32 %v904_v2, %v3755_v14  ;;  %v906_v7 = vpop.f32.mrb[26].mxu0  ;;  %3019 = vmatprep.subr.bf16.mxu0 %v3239_v63  ;;  %v958_v9 = vadd.f32 %v957_v6, %v3755_v14  ;;  %v959_v12 = vpop.f32.mrb[26].mxu1  ;;  %3047 = vmatprep.subr.bf16.mxu1 %v3240_v61  ;;  %v3245_v14 = vld [vmem:[%s4197_s3 + $0x230] sm:$0xff]  }
 0x12b   :  { %v907_v10 = vadd.f32 %v906_v7, %v3759_v16  ;;  %v908_v13 = vpop.f32.mrb[27].mxu0  ;;  %v960_v19 = vadd.f32 %v959_v12, %v3759_v16  ;;  %v961_v21 = vpop.f32.mrb[27].mxu1  ;;  %v986_v22 = vmax.f32 %v903_v0, 0.0  ;;  %v988_v25 = vmax.f32 %v956_v58, 0.0  ;;  %v3256_v12 = vld [vmem:[%s4197_s3 + $0x3c8] sm:$0xff]  }
 0x12c   :  { %v909_v20 = vadd.f32 %v908_v13, %v3759_v16  ;;  %v962_v24 = vadd.f32 %v961_v21, %v3759_v16  ;;  %v987_v26 = vmax.f32 %v905_v5, 0.0  ;;  %v989_v16 = vmax.f32 %v958_v9, 0.0  ;;  %v3253_v5 = vld [vmem:[%s4197_s3 + $0x300] sm:$0xff]   ;;  %v3264_v21 = vld [vmem:[%s4197_s3 + $0x3d8] sm:$0xff]  }
 0x12d   :  { %v1002_v23 = vmax.f32 %v907_v10, 0.0  ;;  %3020 = vmatpush3.bf16.msra.mxu0 %v3241_v4  ;;  %v1004_v27 = vmax.f32 %v960_v19, 0.0  ;;  %3048 = vmatpush3.bf16.msra.mxu1 %v3242_v8  ;;  %v3259_v19 = vld [vmem:[%s4197_s3 + $0x350] sm:$0xff]  }
 0x12e   :  { %v1003_v28 = vmax.f32 %v909_v20, 0.0  ;;  %3021 = vmatprep.subr.bf16.mxu0 %v3243_v60  ;;  %v1005_v32 = vmax.f32 %v962_v24, 0.0  ;;  %3049 = vmatprep.subr.bf16.mxu1 %v3244_v18  ;;  %v3255_v60 = vld [vmem:[%s4197_s3 + $0x348] sm:$0xff]   ;;  %v3263_v20 = vld [vmem:[%s4197_s3 + $0x358] sm:$0xff]   ;;  %v3269_v24 = vld [vmem:[%s4197_s3 + $0x320] sm:$0xff]  }
 0x12f   :  { %v4020_v31 = vpack.c.bf16 %v1002_v23, %v986_v22  ;;  %v4025_v35 = vpack.c.bf16 %v1004_v27, %v988_v25  ;;  %v3257_v18 = vld [vmem:[%s4197_s3 + $0x308] sm:$0xff]   ;;  %v3265_v22 = vld [vmem:[%s4197_s3 + $0x318] sm:$0xff]   ;;  %v3267_v23 = vld [vmem:[%s4197_s3 + $0x360] sm:$0xff]  }
 0x130   :  { %v4027_v37 = vpack.c.bf16 %v1003_v28, %v987_v26  ;;  %v912_v38 = vpop.f32.mrb[28].mxu0  ;;  %v4029_v39 = vpack.c.bf16 %v1005_v32, %v989_v16  ;;  %v965_v41 = vpop.f32.mrb[28].mxu1  ;;  %v3271_v25 = vld [vmem:[%s4197_s3 + $0x368] sm:$0xff]   ;;  %v3277_v16 = vld [vmem:[%s4197_s3 + $0x330] sm:$0xff]  }
 0x131   :  { %3022 = vmatpush3.bf16.msra.mxu0 %v3245_v14  ;;  %v913_v40 = vadd.f32 %v912_v38, %v3757_v15  ;;  %v914_v42 = vpop.f32.mrb[29].mxu0  ;;  %3050 = vmatpush3.bf16.msra.mxu1 %v3246_v29  ;;  %v966_v34 = vadd.f32 %v965_v41, %v3757_v15  ;;  %v967_v44 = vpop.f32.mrb[29].mxu1  ;;  %v3270_v14 = vld [vmem:[%s4197_s3 + $0x3a0] sm:$0xff]   ;;  %v3272_v26 = vld [vmem:[%s4197_s3 + $0x3e8] sm:$0xff]   ;;  %v3275_v29 = vld [vmem:[%s4197_s3 + $0x370] sm:$0xff]   ;;  %v3294_v41 = vmov 0.0  }
 0x132   :  { %v915_v45 = vadd.f32 %v914_v42, %v3757_v15  ;;  %v916_v47 = vpop.f32.mrb[30].mxu0  ;;  %3023 = vmatprep.subr.bf16.mxu0 %v3247_v30  ;;  %v968_v50 = vadd.f32 %v967_v44, %v3757_v15  ;;  %v969_v53 = vpop.f32.mrb[30].mxu1  ;;  %3051 = vmatprep.subr.bf16.mxu1 %v3248_v33  ;;  %v3273_v27 = vld [vmem:[%s4197_s3 + $0x328] sm:$0xff]   ;;  %v3276_v30 = vld [vmem:[%s4197_s3 + $0x3f0] sm:$0xff]   ;;  %v3279_v33 = vld [vmem:[%s4197_s3 + $0x378] sm:$0xff]  }
 0x133   :  { %v917_v51 = vadd.f32 %v916_v47, %v3772_v46  ;;  %v918_v49 = vpop.f32.mrb[31].mxu0  ;;  %v970_v59 = vadd.f32 %v969_v53, %v3772_v46  ;;  %v971_v61 = vpop.f32.mrb[31].mxu1  ;;  %v1018_v62 = vmax.f32 %v913_v40, 0.0  ;;  %v1020_v15 = vmax.f32 %v966_v34, 0.0  ;;  %v3274_v28 = vld [vmem:[%s4197_s3 + $0x3a8] sm:$0xff]   ;;  %v3278_v32 = vld [vmem:[%s4197_s3 + $0x3b0] sm:$0xff]  }
 0x134   :  { %v919_v63 = vadd.f32 %v918_v49, %v3772_v46  ;;  %v972_v1 = vadd.f32 %v971_v61, %v3772_v46  ;;  %v1019_v2 = vmax.f32 %v915_v45, 0.0  ;;  %v1021_v6 = vmax.f32 %v968_v50, 0.0  ;;  %v3254_v46 = vld [vmem:[%s4197_s3 + $0x380] sm:$0xff]   ;;  %v3281_v38 = vld [vmem:[%s4197_s3 + $0x338] sm:$0xff]  }
 0x135   :  { %v1034_v0 = vmax.f32 %v917_v51, 0.0  ;;  %3024 = vmatpush3.bf16.msra.mxu0 %v3249_v43  ;;  %v1036_v4 = vmax.f32 %v970_v59, 0.0  ;;  %3052 = vmatpush3.bf16.msra.mxu1 %v3250_v48  ;;  %v3283_v40 = vld [vmem:[%s4198_s4] ss:$12 sps:$4 sm:$0xff]   ;;  %v3286_v42 = vld [vmem:[%s4198_s4 + $0x18] ss:$12 sps:$4 sm:$0xff]  }
 0x136   :  { %v1035_v58 = vmax.f32 %v919_v63, 0.0  ;;  %3065 = vmatprep.subr.bf16.mxu0 %v3251_v36  ;;  %v1037_v8 = vmax.f32 %v972_v1, 0.0  ;;  %3093 = vmatprep.subr.bf16.mxu1 %v3252_v57  ;;  %v3290_v43 = vld [vmem:[%s4198_s4 + $0x20] ss:$12 sps:$4 sm:$0xff]  }
 0x137   :  { %v4054_v7 = vpack.c.bf16 %v1034_v0, %v1018_v62  ;;  %v4062_v9 = vpack.c.bf16 %v1036_v4, %v1020_v15 }
 0x138   :  { %v4064_v10 = vpack.c.bf16 %v1035_v58, %v1019_v2  ;;  %2323 = vmatmul.mubr.bf16.vlgmr.msra.gmra.mrb[48].mxu0 %v3930_v11  ;;  %v4070_v13 = vpack.c.bf16 %v1037_v8, %v1021_v6  ;;  %2372 = vmatmul.mubr.bf16.vlgmr.msra.gmra.mrb[48].mxu1 %v3935_v17  ;;  %v3258_v11 = vld [vmem:[%s4197_s3 + $0x388] sm:$0xff]   ;;  %v3260_v17 = vld [vmem:[%s4197_s3 + $0x3d0] sm:$0xff]  }
 0x139   :  { %2330 = vmatprep.mubr.bf16.mxu0 %v3975_v55  ;;  %2379 = vmatprep.mubr.bf16.mxu1 %v3977_v56  ;;  %v3261_v55 = vld [vmem:[%s4197_s3 + $0x310] sm:$0xff]  }
 0x13a   :  { %3066 = vmatpush3.bf16.msra.mxu0 %v3253_v5  ;;  %3094 = vmatpush3.bf16.msra.mxu1 %v3254_v46  ;;  %v3262_v56 = vld [vmem:[%s4197_s3 + $0x390] sm:$0xff]  }
 0x13b   :  { %3067 = vmatprep.subr.bf16.mxu0 %v3255_v60  ;;  %3095 = vmatprep.subr.bf16.mxu1 %v3256_v12 }
 0x13e   :  { %3068 = vmatpush3.bf16.msra.mxu0 %v3257_v18  ;;  %3096 = vmatpush3.bf16.msra.mxu1 %v3258_v11 }
 0x13f   :  { %3069 = vmatprep.subr.bf16.mxu0 %v3259_v19  ;;  %3097 = vmatprep.subr.bf16.mxu1 %v3260_v17 }
 0x140   :  { %2331 = vmatmul.mubr.bf16.gmra.mrb[52].mxu0 %v3968_v52  ;;  %2380 = vmatmul.mubr.bf16.gmra.mrb[52].mxu1 %v3973_v54  ;;  %v3266_v52 = vld [vmem:[%s4197_s3 + $0x398] sm:$0xff]   ;;  %v3268_v54 = vld [vmem:[%s4197_s3 + $0x3e0] sm:$0xff]  }
 0x141   :  { %2420 = vmatprep.mubr.bf16.mxu0 %v4027_v37  ;;  %2469 = vmatprep.mubr.bf16.mxu1 %v4029_v39  ;;  %v3280_v37 = vld [vmem:[%s4197_s3 + $0x3f8] sm:$0xff]  }
 0x142   :  { %3070 = vmatpush3.bf16.msra.mxu0 %v3261_v55  ;;  %3098 = vmatpush3.bf16.msra.mxu1 %v3262_v56  ;;  %v3282_v39 = vld [vmem:[%s4197_s3 + $0x3b8] sm:$0xff]  }
 0x143   :  { %3071 = vmatprep.subr.bf16.mxu0 %v3263_v20  ;;  %3099 = vmatprep.subr.bf16.mxu1 %v3264_v21 }
 0x146   :  { %3072 = vmatpush3.bf16.msra.mxu0 %v3265_v22  ;;  %3100 = vmatpush3.bf16.msra.mxu1 %v3266_v52 }
 0x147   :  { %3073 = vmatprep.subr.bf16.mxu0 %v3267_v23  ;;  %3101 = vmatprep.subr.bf16.mxu1 %v3268_v54 }
 0x14a   :  { %3074 = vmatpush3.bf16.msra.mxu0 %v3269_v24  ;;  %3102 = vmatpush3.bf16.msra.mxu1 %v3270_v14 }
 0x14b   :  { %3075 = vmatprep.subr.bf16.mxu0 %v3271_v25  ;;  %3103 = vmatprep.subr.bf16.mxu1 %v3272_v26 }
 0x14e   :  { %3076 = vmatpush3.bf16.msra.mxu0 %v3273_v27  ;;  %3104 = vmatpush3.bf16.msra.mxu1 %v3274_v28 }
 0x14f   :  { %3077 = vmatprep.subr.bf16.mxu0 %v3275_v29  ;;  %3105 = vmatprep.subr.bf16.mxu1 %v3276_v30 }
 0x152   :  { %3078 = vmatpush3.bf16.msra.mxu0 %v3277_v16  ;;  %3106 = vmatpush3.bf16.msra.mxu1 %v3278_v32 }
 0x153   :  { %3079 = vmatprep.subr.bf16.mxu0 %v3279_v33  ;;  %3107 = vmatprep.subr.bf16.mxu1 %v3280_v37 }
 0x156   :  { %3080 = vmatpush3.bf16.msra.mxu0 %v3281_v38  ;;  %3108 = vmatpush3.bf16.msra.mxu1 %v3282_v39 }
 0x157   :  { %3124 = vmatprep.subr.bf16.mxu1 %v3294_v41 }
 0x159   :  { %2421 = vmatmul.mubr.bf16.vlgmr.msra.gmra.mrb[56].mxu0 %v4020_v31  ;;  %2470 = vmatmul.mubr.bf16.vlgmr.msra.gmra.mrb[56].mxu1 %v4025_v35  ;;  %v3285_v31 = vld [vmem:[%s4198_s4 + $0x4] ss:$12 sps:$4 sm:$0xff]   ;;  %v3288_v35 = vld [vmem:[%s4198_s4 + $0x1c] ss:$12 sps:$4 sm:$0xff]  }
 0x15a   :  { %2428 = vmatprep.mubr.bf16.mxu0 %v4064_v10  ;;  %2477 = vmatprep.mubr.bf16.mxu1 %v4070_v13 }
 0x15b   :  { %2552 = vmatprep.subr.bf16.mxu0 %v3285_v31 }
 0x15c   :  { %2553 = vmatpush1.bf16.msra.mxu0 %v3283_v40 }
 0x15d   :  { %2554 = vmatprep.subr.bf16.mxu0 %v3288_v35 }
 0x160   :  { %2555 = vmatpush1.bf16.msra.mxu0 %v3286_v42 }
 0x161   :  { %2429 = vmatmul.mubr.bf16.gmra.mrb[60].mxu0 %v4054_v7  ;;  %2478 = vmatmul.mubr.bf16.gmra.mrb[60].mxu1 %v4062_v9 }
 0x162   :  { %2584 = vmatprep.mubr.bf16.mxu0 %v3293_v3  ;;  %3128 = vmatprep.mubr.msk.bf16.mxu1 %vm3295_vm2, %v3294_v41  ;;  %v3289_v3 = vld [vmem:[%s4198_s4 + $0x8] ss:$12 sps:$4 sm:$0xff]  }
 0x163   :  { %3125 = vmatpush3.bf16.msra.mxu1 %v3289_v3 }
 0x164   :  { %3126 = vmatprep.subr.bf16.mxu1 %v3294_v41 }
 0x167   :  { %3127 = vmatpush3.bf16.msra.mxu1 %v3290_v43 }
 0x1ca   :  { %v2913_v34 = vpop.f32.mrb[32].mxu0  ;;  %v2941_v45 = vpop.f32.mrb[32].mxu1 }
 0x1cb   :  { %v2914_v44 = vpop.f32.mrb[33].mxu0  ;;  %v2942_v48 = vpop.f32.mrb[33].mxu1 }
 0x1cc   :  { %v2915_v47 = vadd.f32 %v2914_v44, %v2913_v34  ;;  %v2916_v36 = vpop.f32.mrb[34].mxu0  ;;  %v2943_v50 = vadd.f32 %v2942_v48, %v2941_v45  ;;  %v2944_v51 = vpop.f32.mrb[34].mxu1 }
 0x1cd   :  { %v2917_v53 = vpop.f32.mrb[35].mxu0  ;;  %v2945_v57 = vpop.f32.mrb[35].mxu1 }
 0x1ce   :  { %v2918_v49 = vadd.f32 %v2917_v53, %v2916_v36  ;;  %v2178_v59 = vadd.f32 %v2943_v50, %v2915_v47  ;;  %v2946_v63 = vadd.f32 %v2945_v57, %v2944_v51 }
 0x1d0   :  { %v2181_v61 = vadd.f32 %v2946_v63, %v2918_v49 }
 0x1d2   :  { %v2919_v62 = vpop.f32.mrb[36].mxu0  ;;  %v2947_v0 = vpop.f32.mrb[36].mxu1 }
 0x1d3   :  { %v2920_v1 = vpop.f32.mrb[37].mxu0  ;;  %v2948_v2 = vpop.f32.mrb[37].mxu1 }
 0x1d4   :  { %v2921_v15 = vadd.f32 %v2920_v1, %v2919_v62  ;;  %v2922_v4 = vpop.f32.mrb[38].mxu0  ;;  %v2949_v58 = vadd.f32 %v2948_v2, %v2947_v0  ;;  %v2950_v5 = vpop.f32.mrb[38].mxu1 }
 0x1d5   :  { %v2923_v6 = vpop.f32.mrb[39].mxu0  ;;  %v2951_v8 = vpop.f32.mrb[39].mxu1 }
 0x1d6   :  { %v2924_v7 = vadd.f32 %v2923_v6, %v2922_v4  ;;  %v2186_v46 = vadd.f32 %v2949_v58, %v2921_v15  ;;  %v2952_v60 = vadd.f32 %v2951_v8, %v2950_v5 }
 0x1d8   :  { %v2189_v9 = vadd.f32 %v2952_v60, %v2924_v7 }
 0x1ea   :  { %v2969_v10 = vpop.f32.mrb[40].mxu0  ;;  %v2997_v12 = vpop.f32.mrb[40].mxu1 }
 0x1eb   :  { %v2970_v13 = vpop.f32.mrb[41].mxu0  ;;  %v2998_v11 = vpop.f32.mrb[41].mxu1 }
 0x1ec   :  { %v2971_v18 = vadd.f32 %v2970_v13, %v2969_v10  ;;  %v2972_v19 = vpop.f32.mrb[42].mxu0  ;;  %v2999_v17 = vadd.f32 %v2998_v11, %v2997_v12  ;;  %v3000_v55 = vpop.f32.mrb[42].mxu1 }
 0x1ed   :  { %v2973_v56 = vpop.f32.mrb[43].mxu0  ;;  %v3001_v22 = vpop.f32.mrb[43].mxu1 }
 0x1ee   :  { %v2227_v20 = vadd.f32 %v2971_v18, %v2178_v59  ;;  %v2974_v21 = vadd.f32 %v2973_v56, %v2972_v19  ;;  %v3002_v52 = vadd.f32 %v3001_v22, %v3000_v55 }
 0x1f0   :  { %v2276_v23 = vadd.f32 %v2999_v17, %v2227_v20  ;;  %v2230_v54 = vadd.f32 %v2974_v21, %v2181_v61 }
 0x1f2   :  { %v2279_v24 = vadd.f32 %v3002_v52, %v2230_v54  ;;  %v2975_v14 = vpop.f32.mrb[44].mxu0  ;;  %v3003_v25 = vpop.f32.mrb[44].mxu1 }
 0x1f3   :  { %v2976_v26 = vpop.f32.mrb[45].mxu0  ;;  %v3004_v28 = vpop.f32.mrb[45].mxu1 }
 0x1f4   :  { %v2977_v27 = vadd.f32 %v2976_v26, %v2975_v14  ;;  %v2978_v29 = vpop.f32.mrb[46].mxu0  ;;  %v3005_v30 = vadd.f32 %v3004_v28, %v3003_v25  ;;  %v3006_v16 = vpop.f32.mrb[46].mxu1 }
 0x1f5   :  { %v2979_v32 = vpop.f32.mrb[47].mxu0  ;;  %v3007_v38 = vpop.f32.mrb[47].mxu1 }
 0x1f6   :  { %v2235_v33 = vadd.f32 %v2977_v27, %v2186_v46  ;;  %v2980_v37 = vadd.f32 %v2979_v32, %v2978_v29  ;;  %v3008_v39 = vadd.f32 %v3007_v38, %v3006_v16 }
 0x1f8   :  { %v2284_v40 = vadd.f32 %v3005_v30, %v2235_v33  ;;  %v2238_v41 = vadd.f32 %v2980_v37, %v2189_v9 }
 0x1fa   :  { %v2287_v31 = vadd.f32 %v3008_v39, %v2238_v41 }
 0x20b   :  { %v3025_v35 = vpop.f32.mrb[48].mxu0  ;;  %v3053_v3 = vpop.f32.mrb[48].mxu1 }
 0x20c   :  { %v3026_v42 = vpop.f32.mrb[49].mxu0  ;;  %v3054_v34 = vpop.f32.mrb[49].mxu1 }
 0x20d   :  { %v3027_v43 = vadd.f32 %v3026_v42, %v3025_v35  ;;  %v3028_v45 = vpop.f32.mrb[50].mxu0  ;;  %v3055_v44 = vadd.f32 %v3054_v34, %v3053_v3  ;;  %v3056_v47 = vpop.f32.mrb[50].mxu1 }
 0x20e   :  { %v3029_v48 = vpop.f32.mrb[51].mxu0  ;;  %v3057_v51 = vpop.f32.mrb[51].mxu1 }
 0x20f   :  { %v2325_v36 = vadd.f32 %v3027_v43, %v2276_v23  ;;  %v3030_v50 = vadd.f32 %v3029_v48, %v3028_v45  ;;  %v3058_v53 = vadd.f32 %v3057_v51, %v3056_v47  ;;  %v2637_v47 = vlaneseq }
 0x211   :  { %v2374_v49 = vadd.f32 %v3055_v44, %v2325_v36  ;;  %v2328_v57 = vadd.f32 %v3030_v50, %v2279_v24  ;;  %v2638_v48 = vshrl.u32 %v2637_v47, 7  ;;  %v2635_v50 = vld [vmem:[%s4199_s5] sm:$0x3] }
 0x213   :  { %v2377_v59 = vadd.f32 %v3058_v53, %v2328_v57  ;;  %v3031_v63 = vpop.f32.mrb[52].mxu0  ;;  %v3059_v61 = vpop.f32.mrb[52].mxu1  ;;  %v2643_v36 = vsub.s32 1, %v2638_v48  ;;  %v2639_v51 = vsub.s32 0, %v2638_v48 }
 0x214   :  { %v3032_v62 = vpop.f32.mrb[53].mxu0  ;;  %v3060_v1 = vpop.f32.mrb[53].mxu1 }
 0x215   :  { %v3033_v0 = vadd.f32 %v3032_v62, %v3031_v63  ;;  %v3034_v15 = vpop.f32.mrb[54].mxu0  ;;  %v3061_v2 = vadd.f32 %v3060_v1, %v3059_v61  ;;  %v3062_v4 = vpop.f32.mrb[54].mxu1  ;;  %v2644_v53 = vrot.slane %v2635_v50, %v2643_v36 }
 0x216   :  { %v3035_v58 = vpop.f32.mrb[55].mxu0  ;;  %v3063_v7 = vpop.f32.mrb[55].mxu1 }
 0x217   :  { %v2333_v5 = vadd.f32 %v3033_v0, %v2284_v40  ;;  %v3036_v6 = vadd.f32 %v3035_v58, %v3034_v15  ;;  %v3064_v8 = vadd.f32 %v3063_v7, %v3062_v4 }
 0x219   :  { %v2382_v46 = vadd.f32 %v3061_v2, %v2333_v5  ;;  %v2336_v60 = vadd.f32 %v3036_v6, %v2287_v31 }
 0x21b   :  { %v2385_v9 = vadd.f32 %v3064_v8, %v2336_v60 }
 0x22c   :  { %v3081_v10 = vpop.f32.mrb[56].mxu0  ;;  %v3109_v12 = vpop.f32.mrb[56].mxu1 }
 0x22d   :  { %v3082_v13 = vpop.f32.mrb[57].mxu0  ;;  %v3110_v11 = vpop.f32.mrb[57].mxu1 }
 0x22e   :  { %v3083_v18 = vadd.f32 %v3082_v13, %v3081_v10  ;;  %v3084_v19 = vpop.f32.mrb[58].mxu0  ;;  %v3111_v17 = vadd.f32 %v3110_v11, %v3109_v12  ;;  %v3112_v55 = vpop.f32.mrb[58].mxu1 }
 0x22f   :  { %v3085_v56 = vpop.f32.mrb[59].mxu0  ;;  %v3113_v22 = vpop.f32.mrb[59].mxu1 }
 0x230   :  { %v2423_v20 = vadd.f32 %v3083_v18, %v2374_v49  ;;  %v3086_v21 = vadd.f32 %v3085_v56, %v3084_v19  ;;  %v3114_v52 = vadd.f32 %v3113_v22, %v3112_v55  ;;  %v2640_v49 = vrot.slane %v2635_v50, %v2639_v51 }
 0x232   :  { %v2472_v23 = vadd.f32 %v3111_v17, %v2423_v20  ;;  %v2426_v54 = vadd.f32 %v3086_v21, %v2377_v59 }
 0x234   :  { %v2475_v24 = vadd.f32 %v3114_v52, %v2426_v54  ;;  %v3087_v14 = vpop.f32.mrb[60].mxu0  ;;  %v3115_v25 = vpop.f32.mrb[60].mxu1  ;;  %v2486_v27 = vmul.f32 0.00390625, %v2472_v23 }
 0x235   :  { %v3088_v26 = vpop.f32.mrb[61].mxu0  ;;  %v3116_v30 = vpop.f32.mrb[61].mxu1 }
 0x236   :  { %v2487_v28 = vmul.f32 0.00390625, %v2475_v24  ;;  %v3089_v29 = vadd.f32 %v3088_v26, %v3087_v14  ;;  %v3090_v16 = vpop.f32.mrb[62].mxu0  ;;  %v3117_v32 = vadd.f32 %v3116_v30, %v3115_v25  ;;  %v3118_v33 = vpop.f32.mrb[62].mxu1 }
 0x237   :  { %v3091_v37 = vpop.f32.mrb[63].mxu0  ;;  %v3119_v40 = vpop.f32.mrb[63].mxu1 }
 0x238   :  { %v2431_v38 = vadd.f32 %v3089_v29, %v2382_v46  ;;  %v3092_v39 = vadd.f32 %v3091_v37, %v3090_v16  ;;  %v2490_v41 = vpack.c.bf16 %v2487_v28, %v2486_v27  ;;  %v3120_v31 = vadd.f32 %v3119_v40, %v3118_v33 }
 0x23a   :  { %v2480_v35 = vadd.f32 %v3117_v32, %v2431_v38  ;;  %v2434_v3 = vadd.f32 %v3092_v39, %v2385_v9  ;;  %2500 = vxpose.xlu0.c.b16.start [1/2] (short) (narrow) %v2490_v41, 16 }
 0x23c   :  { %v2483_v42 = vadd.f32 %v3120_v31, %v2434_v3  ;;  %v2488_v43 = vmul.f32 0.00390625, %v2480_v35 }
 0x23e   :  { %v2489_v34 = vmul.f32 0.00390625, %v2483_v42 }
 0x240   :  { %v2491_v45 = vpack.c.bf16 %v2489_v34, %v2488_v43 }
 0x242   :  { %2501 = vxpose.xlu0.c.b16.end [2/2] (short) (narrow) %v2491_v45, 16 }
 0x2a4   :  { %v2508_v44 = vpop.trf.xlu0 }
 0x2a5   :  { %2895 = vmatmul.mubr.msk.bf16.vlgmr.msra.gmra.mrb[64].mxu0 %vm2548_vm3, %v2508_v44  ;;  %3129 = vmatmul.mubr.msk.bf16.vlgmr.msra.gmra.mrb[64].mxu1 %vm2548_vm3, %v2508_v44 }
 0x378   :  { %v2586_v57 = vpop.f32.mrb[64].mxu0  ;;  %v2627_v59 = vpop.f32.mrb[64].mxu1 }
 0x379   :  { %3291 = vtanh.f32 %v2586_v57  ;;  %v2648_v63 = vadd.f32 %v2644_v53, %v2627_v59  ;;  %v2588_v61 = vpop.f32.mrb[65].mxu0  ;;  %v3130_v62 = vpop.f32.mrb[65].mxu1 }
 0x37a   :  { %v2647_v0 = vadd.f32 %v2640_v49, %v2588_v61  ;;  %v2590_v1 = vpop.f32.mrb[66].mxu0  ;;  %v2630_v15 = vpop.f32.mrb[66].mxu1 }
 0x37b   :  { %2650 = vst [vmem:[%s4200_s6 + $0x10] sm:$0xff] %v2648_v63  ;;  %v2591_v2 = vpop.f32.mrb[67].mxu0  ;;  %v3131_v4 = vpop.f32.mrb[67].mxu1 }
 0x37c   :  { %2649 = vst [vmem:[%s4200_s6 + $0x8] sm:$0xff] %v2647_v0 }
 0x383   :  { %v3292_v58 = vpop.eup %3291 }
 0x384   :  { %2634 = vst [vmem:[%s4200_s6] sm:$0xff] %v3292_v58 }

</bundles_post_ra>
